<compile_context>
chip_gen: v7x
topology: tpu7x:2x2x1
jax: 0.10.0
libtpu: 0.0.40
codegen_flags: <defaults>
</compile_context>

<pallas_src>
import functools
import math

import jax
import jax.numpy as jnp
from jax import lax
from jax.experimental import pallas as pl
from jax.experimental.pallas import tpu as pltpu

LANE = 128      # lane width of a vreg (last dim)
SUBLANE = 8     # f32 sublane count (second-to-last dim)

_VMEM_BUDGET = 32 * 1024 * 1024   # bytes used for tile-size selection (safe on v7x 64 MiB)
_VMEM_LIMIT = 40 * 1024 * 1024    # explicit scoped-VMEM limit handed to Mosaic


def _round_up(x, m):
    return ((x + m - 1) // m) * m


@functools.lru_cache(maxsize=None)
def _gate_dtype():
    """bf16 gate nonlinearities only on chips with a bf16 EUP/VPU (v6e, v7x)."""
    try:
        kind = jax.devices()[0].device_kind.lower()
    except Exception:
        return jnp.float32
    if any(tag in kind for tag in ("v6", "v7", "tpu7", "7x")):
        return jnp.bfloat16
    return jnp.float32


# ------------------------------ Tile selection --------------------------------
def _choose_batch_block(batch):
    """Pick (Bp, b_block): minimise padded rows, then MXU row fill, then
    expose >=2 parallel batch blocks (dual-TC), then prefer larger blocks."""
    bp0 = _round_up(batch, SUBLANE)
    best = None
    for blk in range(SUBLANE, 257, SUBLANE):
        bp = _round_up(bp0, blk)
        n_blocks = bp // blk
        key = (
            bp,                                  # 1) minimal padded rows
            0 if blk >= min(128, bp) else 1,     # 2) keep MXU rows filled
            0 if n_blocks >= 2 else 1,           # 3) >=2 blocks for dual-TC
            -blk,                                # 4) larger block
        )
        if best is None or key < best[0]:
            best = (key, bp, blk)
    return best[1], best[2]


def _choose_time_chunk(T, b_block, hp, desired, budget):
    """Largest time chunk <= desired that divides T and fits the VMEM budget."""
    tc = max(1, min(desired, T))
    while tc > 1:
        if T % tc == 0:
            est = (2 * tc * b_block * 4 * hp * 2     # gin chunk bf16, double-buffered
                   + 2 * tc * b_block * hp * 4       # out chunk f32, double-buffered
                   + 2 * hp * 4 * hp * 2             # whh bf16 (default buffering)
                   + 2 * b_block * hp * 4)           # h/c carries
            if est <= budget:
                return tc
        tc -= 1
    return 1


def _choose_matmul_tiles(n_rows, K, M, out_bytes, budget, out_is_bf16):
    """Pick (row_tile, k_tile) for the projection / head matmul."""
    if K > 1024 and K % LANE == 0:
        k_tile = LANE
        for cand in range(512, LANE - 1, -LANE):
            if K % cand == 0:
                k_tile = cand
                break
    else:
        k_tile = K
    step = 16 if (out_is_bf16 and n_rows % 16 == 0) else 8
    cap = min(n_rows, 1024)
    row_tile = step
    for cand in range(step, cap + 1, step):
        if n_rows % cand:
            continue
        est = (2 * cand * k_tile * 4      # x block (f32 worst case), double-buffered
               + 2 * k_tile * M * 2       # weight block bf16
               + 2 * M * 4                # bias
               + 2 * cand * M * out_bytes # out block
               + cand * M * 4)            # f32 accumulator scratch
        if est <= budget:
            row_tile = cand
    return row_tile, k_tile


# --------------------------- Tiled matmul + bias ------------------------------
def _matmul_bias_kernel(x_ref, w_ref, b_ref, o_ref, acc_ref):
    @pl.when(pl.program_id(1) == 0)
    def _():
        acc_ref[...] = jnp.zeros_like(acc_ref)

    acc_ref[...] += jnp.dot(
        x_ref[...].astype(jnp.bfloat16), w_ref[...],
        preferred_element_type=jnp.float32)

    @pl.when(pl.program_id(1) == pl.num_programs(1) - 1)
    def _():
        o_ref[...] = (acc_ref[...] + b_ref[...]).astype(o_ref.dtype)


def matmul_bias(x2d, w, b, out_dtype):
    """x2d: (N, K) f32/bf16, w: (K, M) bf16, b: (1, M) f32 -> (N, M) out_dtype.

    Rows are tiled (parallel axis); K is tiled (arbitrary axis) with an f32
    VMEM accumulator so large weights never need to be fully resident.
    """
    N, K = x2d.shape
    M = w.shape[1]
    out_dtype = jnp.dtype(out_dtype)
    row_tile, k_tile = _choose_matmul_tiles(
        N, K, M, out_dtype.itemsize, _VMEM_BUDGET, out_dtype == jnp.bfloat16)
    assert N % row_tile == 0 and K % k_tile == 0
    return pl.pallas_call(
        _matmul_bias_kernel,
        out_shape=jax.ShapeDtypeStruct((N, M), out_dtype),
        grid_spec=pltpu.PrefetchScalarGridSpec(
            num_scalar_prefetch=0,
            grid=(N // row_tile, K // k_tile),
            in_specs=[
                pl.BlockSpec((row_tile, k_tile), lambda i, k: (i, k)),
                pl.BlockSpec((k_tile, M), lambda i, k: (k, 0)),
                pl.BlockSpec((1, M), lambda i, k: (0, 0)),
            ],
            out_specs=pl.BlockSpec((row_tile, M), lambda i, k: (i, 0)),
            scratch_shapes=[pltpu.VMEM((row_tile, M), jnp.float32)],
        ),
        compiler_params=pltpu.CompilerParams(
            dimension_semantics=("parallel", "arbitrary"),
            vmem_limit_bytes=_VMEM_LIMIT,
        ),
    )(x2d, w, b)


# ----------------------------- LSTM recurrence --------------------------------
def _lstm_recurrent_kernel(gin_ref, whh_ref, out_ref, h_scr, c_scr, *,
                           hp, tc, gate_dtype):
    """Grid = (batch_block, time_chunk).  Time chunks run sequentially.

    gin_ref : (Tc, Bblk, 4*Hp) bf16  precomputed x @ W_ih + bias for this chunk
    whh_ref : (Hp, 4*Hp)       bf16  hidden->gates weight (resident)
    out_ref : (Tc, Bblk, Hp)   f32   hidden-state outputs for this chunk
    h_scr, c_scr : (Bblk, Hp)  f32   recurrence carry across time chunks
    """
    @pl.when(pl.program_id(1) == 0)
    def _():
        h_scr[...] = jnp.zeros_like(h_scr)
        c_scr[...] = jnp.zeros_like(c_scr)

    w = whh_ref[...]

    def step(s, carry):
        h, c = carry
        # Small recurrent matmul on the MXU: bf16 operands, f32 accumulation.
        g = gin_ref[s].astype(jnp.float32) + jnp.dot(
            h.astype(jnp.bfloat16), w, preferred_element_type=jnp.float32)
        g = g.astype(gate_dtype)          # bf16 transcendentals on v6e/v7x
        # Gate blocks are Hp-wide (multiple of 128) -> lane-aligned slices.
        i_g = jax.nn.sigmoid(g[:, 0 * hp:1 * hp])
        f_g = jax.nn.sigmoid(g[:, 1 * hp:2 * hp])
        g_g = jnp.tanh(g[:, 2 * hp:3 * hp])
        o_g = jax.nn.sigmoid(g[:, 3 * hp:4 * hp])
        # c/h state stays f32.
        c = f_g.astype(jnp.float32) * c + i_g.astype(jnp.float32) * g_g.astype(jnp.float32)
        h = o_g.astype(jnp.float32) * jnp.tanh(c)
        out_ref[s] = h
        return h, c

    h = h_scr[...]
    c = c_scr[...]
    if tc <= 8:
        # Short chunks: full static unroll (max LLO scheduling visibility).
        for s in range(tc):
            h, c = step(s, (h, c))
    else:
        # Long chunks: partial unroll bounds vreg live ranges (64 vregs).
        h, c = lax.fori_loop(0, tc, step, (h, c), unroll=4)

    h_scr[...] = h
    c_scr[...] = c


def lstm_recurrence(gates_in, w_hh_t, time_chunk, b_block):
    """gates_in: (T, Bp, 4*Hp) bf16, w_hh_t: (Hp, 4*Hp) bf16 -> (T, Bp, Hp) f32."""
    T, Bp, G = gates_in.shape
    Hp = w_hh_t.shape[0]
    assert G == 4 * Hp
    assert T % time_chunk == 0 and Bp % b_block == 0

    kernel = functools.partial(_lstm_recurrent_kernel, hp=Hp, tc=time_chunk,
                               gate_dtype=_gate_dtype())
    return pl.pallas_call(
        kernel,
        out_shape=jax.ShapeDtypeStruct((T, Bp, Hp), jnp.float32),
        grid_spec=pltpu.PrefetchScalarGridSpec(
            num_scalar_prefetch=0,
            grid=(Bp // b_block, T // time_chunk),
            in_specs=[
                pl.BlockSpec((time_chunk, b_block, 4 * Hp), lambda b, t: (t, b, 0)),
                pl.BlockSpec((Hp, 4 * Hp), lambda b, t: (0, 0)),
            ],
            out_specs=pl.BlockSpec((time_chunk, b_block, Hp), lambda b, t: (t, b, 0)),
            scratch_shapes=[
                pltpu.VMEM((b_block, Hp), jnp.float32),
                pltpu.VMEM((b_block, Hp), jnp.float32),
            ],
        ),
        compiler_params=pltpu.CompilerParams(
            # batch blocks are independent -> parallel (megacore / dual-TC);
            # time chunks carry h/c via scratch -> arbitrary (sequential,
            # and time is the fastest axis so the pl.when reset is correct).
            dimension_semantics=("parallel", "arbitrary"),
            vmem_limit_bytes=_VMEM_LIMIT,
        ),
    )(gates_in, w_hh_t)


# ------------------------------ Parameter setup --------------------------------
def init_params(key, inp_size, hid_size, op_size, num_layers):
    """PyTorch-like init.  Returns (kernel_params, ref_params).

    kernel_params hold transposed, lane-padded, bf16 weights:
      lstm[l]: w_ih_t (D_in, 4*Hp) bf16, w_hh_t (Hp, 4*Hp) bf16, bias (1, 4*Hp) f32
      dense  : w_t (Hp, Op) bf16, bias (1, Op) f32
    Per-gate columns are padded H -> Hp with exact zeros (also exact in bf16),
    so padded hidden lanes stay exactly zero through the recurrence.
    ref_params keep unpadded f32 weights for the pure-JAX reference.
    """
    Hp = _round_up(hid_size, LANE)
    Op = _round_up(op_size, LANE)
    k_unif = 1.0 / math.sqrt(hid_size)

    def pad_gate_cols(w_t, H):
        # (D, 4H) -> (D, 4*Hp): pad each of the 4 gate blocks to Hp columns.
        D = w_t.shape[0]
        w4 = w_t.reshape(D, 4, H)
        w4 = jnp.pad(w4, ((0, 0), (0, 0), (0, Hp - H)))
        return w4.reshape(D, 4 * Hp)

    kernel_params = {"lstm": []}
    ref_params = {"lstm": []}
    for layer in range(num_layers):
        d_in = inp_size if layer == 0 else hid_size
        d_in_k = inp_size if layer == 0 else Hp   # kernel-facing input width
        key, k1, k2, k3, k4 = jax.random.split(key, 5)
        w_ih = jax.random.uniform(k1, (4 * hid_size, d_in), jnp.float32, -k_unif, k_unif)
        w_hh = jax.random.uniform(k2, (4 * hid_size, hid_size), jnp.float32, -k_unif, k_unif)
        b_ih = jax.random.uniform(k3, (4 * hid_size,), jnp.float32, -k_unif, k_unif)
        b_hh = jax.random.uniform(k4, (4 * hid_size,), jnp.float32, -k_unif, k_unif)

        ref_params["lstm"].append(
            dict(w_ih_t=w_ih.T, w_hh_t=w_hh.T, bias=(b_ih + b_hh).reshape(1, -1))
        )

        w_ih_t = pad_gate_cols(w_ih.T, hid_size)                  # (d_in, 4*Hp)
        w_ih_t = jnp.pad(w_ih_t, ((0, d_in_k - d_in), (0, 0)))    # pad input rows (layers > 0)
        w_hh_t = pad_gate_cols(w_hh.T, hid_size)                  # (H, 4*Hp)
        w_hh_t = jnp.pad(w_hh_t, ((0, Hp - hid_size), (0, 0)))    # (Hp, 4*Hp)
        bias = (b_ih + b_hh).reshape(4, hid_size)
        bias = jnp.pad(bias, ((0, 0), (0, Hp - hid_size))).reshape(1, 4 * Hp)
        kernel_params["lstm"].append(dict(
            w_ih_t=w_ih_t.astype(jnp.bfloat16),
            w_hh_t=w_hh_t.astype(jnp.bfloat16),
            bias=bias,
        ))

    key, kd1, kd2 = jax.random.split(key, 3)
    bound = math.sqrt(6.0 / (hid_size + op_size))   # xavier_uniform
    w_dense = jax.random.uniform(kd1, (op_size, hid_size), jnp.float32, -bound, bound)
    b_dense = jax.random.uniform(kd2, (op_size,), jnp.float32, -k_unif, k_unif)
    ref_params["dense"] = dict(w_t=w_dense.T, bias=b_dense.reshape(1, -1))
    kernel_params["dense"] = dict(
        w_t=jnp.pad(w_dense.T, ((0, Hp - hid_size), (0, Op - op_size))).astype(jnp.bfloat16),
        bias=jnp.pad(b_dense, (0, Op - op_size)).reshape(1, Op),
    )
    return kernel_params, ref_params


# ---------------------------------- Forward ------------------------------------
@functools.partial(jax.jit, static_argnames=("op_size", "time_chunk"))
def rnn_forward(x_btd, params, *, op_size, time_chunk=32):
    """x_btd: (B, T, inp_size) -> (B, T, op_size)."""
    B, T, _ = x_btd.shape

    # Batch padding / blocking chosen to minimise redundant rows first.
    Bp, b_block = _choose_batch_block(B)
    n_rows = T * Bp

    # time-major, batch-padded input (padded rows sliced away at the end)
    h = jnp.transpose(x_btd, (1, 0, 2))               # (T, B, D)
    h = jnp.pad(h, ((0, 0), (0, Bp - B), (0, 0)))     # (T, Bp, D)

    for lp in params["lstm"]:
        d_l = h.shape[-1]
        g_cols = lp["w_ih_t"].shape[1]                # 4*Hp
        hp = g_cols // 4
        # Hoisted, time-parallel input projection; gates_in stored bf16.
        gates_in = matmul_bias(
            h.reshape(n_rows, d_l), lp["w_ih_t"], lp["bias"], out_dtype=jnp.bfloat16
        ).reshape(T, Bp, g_cols)
        # Serial recurrence only does h @ W_hh + gate elementwise math.
        tc = _choose_time_chunk(T, b_block, hp, time_chunk, _VMEM_BUDGET)
        h = lstm_recurrence(gates_in, lp["w_hh_t"], tc, b_block)   # (T, Bp, Hp) f32

    Hp = h.shape[-1]
    out = matmul_bias(
        h.reshape(n_rows, Hp), params["dense"]["w_t"], params["dense"]["bias"],
        out_dtype=jnp.float32,
    )                                                  # (T*Bp, Op)
    Op = out.shape[-1]
    out = out.reshape(T, Bp, Op)[:, :B, :op_size]
    return jnp.transpose(out, (1, 0, 2))               # (B, T, op_size)


# --------------------------- Pure-JAX reference check ---------------------------
def rnn_forward_ref(x_btd, ref_params):
    h_seq = jnp.transpose(x_btd, (1, 0, 2))
    for p in ref_params["lstm"]:
        B = h_seq.shape[1]
        H = p["w_hh_t"].shape[0]

        def step(carry, x_t, p=p, H=H):
            h, c = carry
            gates = x_t @ p["w_ih_t"] + h @ p["w_hh_t"] + p["bias"]
            i = jax.nn.sigmoid(gates[:, 0 * H:1 * H])
            f = jax.nn.sigmoid(gates[:, 1 * H:2 * H])
            g = jnp.tanh(gates[:, 2 * H:3 * H])
            o = jax.nn.sigmoid(gates[:, 3 * H:4 * H])
            c = f * c + i * g
            h = o * jnp.tanh(c)
            return (h, c), h

        init = (jnp.zeros((B, H), jnp.float32), jnp.zeros((B, H), jnp.float32))
        _, h_seq = jax.lax.scan(step, init, h_seq)
    out = h_seq @ ref_params["dense"]["w_t"] + ref_params["dense"]["bias"]
    return jnp.transpose(out, (1, 0, 2))


if __name__ == "__main__":
    # Small shapes consistent with the module's forward.
    B, T = 2, 8
    INP, HID, OP, NUM_LAYERS = 4, 32, 8, 2

    key = jax.random.PRNGKey(0)
    key, kx = jax.random.split(key)
    x = jax.random.normal(kx, (B, T, INP), jnp.float32)
    kernel_params, ref_params = init_params(key, INP, HID, OP, NUM_LAYERS)

    out = rnn_forward(x, kernel_params, op_size=OP, time_chunk=32)
    out = jax.block_until_ready(out)

    ref = rnn_forward_ref(x, ref_params)
    assert out.shape == (B, T, OP), out.shape
    # bf16 weights / bf16 gate inputs across 2 stacked LSTM layers: loosened
    # tolerance vs the f32 reference (f32 state + f32 accumulation retained).
    assert jnp.allclose(out, ref, atol=7e-2, rtol=5e-2), "mismatch vs JAX reference"

    print("KERNEL_OK")
</pallas_src>

<mosaic_0001>
module attributes {stable_mosaic.version = 11 : i64} {
  func.func @_matmul_bias_kernel(%arg0: i32, %arg1: i32, %arg2: memref<64x4xf32, #tpu.memory_space<vmem>>, %arg3: memref<4x512xbf16, #tpu.memory_space<vmem>>, %arg4: memref<1x512xf32, #tpu.memory_space<vmem>>, %arg5: memref<64x512xbf16, #tpu.memory_space<vmem>>, %arg6: memref<64x512xf32, #tpu.memory_space<vmem>>) attributes {dimension_semantics = [#tpu.dimension_semantics<parallel>, #tpu.dimension_semantics<arbitrary>], iteration_bounds = array<i64: 1, 1>, scalar_prefetch = 0 : i64, scratch_operands = 1 : i64, tpu.core_type = #tpu.core_type<tc>, window_params = [{transform_indices = @transform_0, window_bounds = array<i64: 64, 4>}, {transform_indices = @transform_1, window_bounds = array<i64: 4, 512>}, {pipeline_mode = #tpu.pipeline_mode<synchronous>, transform_indices = @transform_2, window_bounds = array<i64: 1, 512>}, {transform_indices = @transform_3, window_bounds = array<i64: 64, 512>}]} {
    %c0_i32 = arith.constant 0 : i32
    %0 = arith.cmpi eq, %arg1, %c0_i32 : i32
    %1 = arith.extui %0 : i1 to i32
    %c0_i32_0 = arith.constant 0 : i32
    %2 = arith.cmpi ne, %1, %c0_i32_0 : i32
    scf.if %2 {
      %cst_10 = arith.constant 0.000000e+00 : f32
      %13 = vector.broadcast %cst_10 : f32 to vector<64x512xf32>
      %c0_11 = arith.constant 0 : index
      %c0_12 = arith.constant 0 : index
      %14 = vector.load %arg6[%c0_11, %c0_12] : memref<64x512xf32, #tpu.memory_space<vmem>>, vector<64x512xf32>
      tpu.vector_store %arg6[%c0_11, %c0_12], %13 {strides = array<i32>} : memref<64x512xf32, #tpu.memory_space<vmem>>, vector<64x512xf32>,
    } else {
    }
    %c0 = arith.constant 0 : index
    %c0_1 = arith.constant 0 : index
    %3 = vector.load %arg6[%c0, %c0_1] : memref<64x512xf32, #tpu.memory_space<vmem>>, vector<64x512xf32>
    %c0_2 = arith.constant 0 : index
    %c0_3 = arith.constant 0 : index
    %4 = vector.load %arg2[%c0_2, %c0_3] : memref<64x4xf32, #tpu.memory_space<vmem>>, vector<64x4xf32>
    %5 = arith.truncf %4 : vector<64x4xf32> to vector<64x4xbf16>
    %c0_4 = arith.constant 0 : index
    %c0_5 = arith.constant 0 : index
    %6 = vector.load %arg3[%c0_4, %c0_5] : memref<4x512xbf16, #tpu.memory_space<vmem>>, vector<4x512xbf16>
    %cst = arith.constant dense<0.000000e+00> : vector<64x512xf32>
    %7 = tpu.matmul %5, %6, %cst {dimension_numbers = #tpu.dot_dimension_numbers<[1], [0], [0], [1], [0, 0, 1, 1], [], []>} : vector<64x4xbf16>, vector<4x512xbf16>, vector<64x512xf32> -> vector<64x512xf32>
    %8 = arith.addf %3, %7 : vector<64x512xf32>
    %c0_6 = arith.constant 0 : index
    %c0_7 = arith.constant 0 : index
    %9 = vector.load %arg6[%c0_6, %c0_7] : memref<64x512xf32, #tpu.memory_space<vmem>>, vector<64x512xf32>
    tpu.vector_store %arg6[%c0_6, %c0_7], %8 {strides = array<i32>} : memref<64x512xf32, #tpu.memory_space<vmem>>, vector<64x512xf32>,
    %c0_i32_8 = arith.constant 0 : i32
    %10 = arith.cmpi eq, %arg1, %c0_i32_8 : i32
    %11 = arith.extui %10 : i1 to i32
    %c0_i32_9 = arith.constant 0 : i32
    %12 = arith.cmpi ne, %11, %c0_i32_9 : i32
    scf.if %12 {
      %c0_10 = arith.constant 0 : index
      %c0_11 = arith.constant 0 : index
      %13 = vector.load %arg6[%c0_10, %c0_11] : memref<64x512xf32, #tpu.memory_space<vmem>>, vector<64x512xf32>
      %c0_12 = arith.constant 0 : index
      %c0_13 = arith.constant 0 : index
      %14 = vector.load %arg4[%c0_12, %c0_13] : memref<1x512xf32, #tpu.memory_space<vmem>>, vector<1x512xf32>
      %15 = vector.broadcast %14 : vector<1x512xf32> to vector<64x512xf32>
      %16 = arith.addf %13, %15 : vector<64x512xf32>
      %17 = arith.truncf %16 : vector<64x512xf32> to vector<64x512xbf16>
      %c0_14 = arith.constant 0 : index
      %c0_15 = arith.constant 0 : index
      %18 = vector.load %arg5[%c0_14, %c0_15] : memref<64x512xbf16, #tpu.memory_space<vmem>>, vector<64x512xbf16>
      tpu.vector_store %arg5[%c0_14, %c0_15], %17 {strides = array<i32>} : memref<64x512xbf16, #tpu.memory_space<vmem>>, vector<64x512xbf16>,
    } else {
    }
    return
  }
  func.func @transform_0(%arg0: i32, %arg1: i32) -> (i32, i32) {
    %c0_i32 = arith.constant 0 : i32
    return %arg0, %arg1 : i32, i32
  }
  func.func @transform_1(%arg0: i32, %arg1: i32) -> (i32, i32) {
    %c0_i32 = arith.constant 0 : i32
    %c0_i32_0 = arith.constant 0 : i32
    return %arg1, %c0_i32 : i32, i32
  }
  func.func @transform_2(%arg0: i32, %arg1: i32) -> (i32, i32) {
    %c0_i32 = arith.constant 0 : i32
    %c0_i32_0 = arith.constant 0 : i32
    %c0_i32_1 = arith.constant 0 : i32
    return %c0_i32, %c0_i32_0 : i32, i32
  }
  func.func @transform_3(%arg0: i32, %arg1: i32) -> (i32, i32) {
    %c0_i32 = arith.constant 0 : i32
    %c0_i32_0 = arith.constant 0 : i32
    return %arg0, %c0_i32 : i32, i32
  }
}

module attributes {stable_mosaic.version = 11 : i64} {
  func.func @_lstm_recurrent_kernel(%arg0: i32, %arg1: i32, %arg2: memref<8x8x512xbf16, #tpu.memory_space<vmem>>, %arg3: memref<128x512xbf16, #tpu.memory_space<vmem>>, %arg4: memref<8x8x128xf32, #tpu.memory_space<vmem>>, %arg5: memref<8x128xf32, #tpu.memory_space<vmem>>, %arg6: memref<8x128xf32, #tpu.memory_space<vmem>>) attributes {dimension_semantics = [#tpu.dimension_semantics<parallel>, #tpu.dimension_semantics<arbitrary>], iteration_bounds = array<i64: 1, 1>, scalar_prefetch = 0 : i64, scratch_operands = 2 : i64, tpu.core_type = #tpu.core_type<tc>, window_params = [{transform_indices = @transform_0, window_bounds = array<i64: 8, 8, 512>}, {pipeline_mode = #tpu.pipeline_mode<synchronous>, transform_indices = @transform_1, window_bounds = array<i64: 128, 512>}, {transform_indices = @transform_2, window_bounds = array<i64: 8, 8, 128>}]} {
    %c0_i32 = arith.constant 0 : i32
    %0 = arith.cmpi eq, %arg1, %c0_i32 : i32
    %1 = arith.extui %0 : i1 to i32
    %c0_i32_0 = arith.constant 0 : i32
    %2 = arith.cmpi ne, %1, %c0_i32_0 : i32
    scf.if %2 {
      %cst_82 = arith.constant 0.000000e+00 : f32
      %280 = vector.broadcast %cst_82 : f32 to vector<8x128xf32>
      %c0_83 = arith.constant 0 : index
      %c0_84 = arith.constant 0 : index
      %281 = vector.load %arg5[%c0_83, %c0_84] : memref<8x128xf32, #tpu.memory_space<vmem>>, vector<8x128xf32>
      tpu.vector_store %arg5[%c0_83, %c0_84], %280 {strides = array<i32>} : memref<8x128xf32, #tpu.memory_space<vmem>>, vector<8x128xf32>,
      %cst_85 = arith.constant 0.000000e+00 : f32
      %282 = vector.broadcast %cst_85 : f32 to vector<8x128xf32>
      %c0_86 = arith.constant 0 : index
      %c0_87 = arith.constant 0 : index
      %283 = vector.load %arg6[%c0_86, %c0_87] : memref<8x128xf32, #tpu.memory_space<vmem>>, vector<8x128xf32>
      tpu.vector_store %arg6[%c0_86, %c0_87], %282 {strides = array<i32>} : memref<8x128xf32, #tpu.memory_space<vmem>>, vector<8x128xf32>,
    } else {
    }
    %c0 = arith.constant 0 : index
    %c0_1 = arith.constant 0 : index
    %3 = vector.load %arg3[%c0, %c0_1] : memref<128x512xbf16, #tpu.memory_space<vmem>>, vector<128x512xbf16>
    %c0_2 = arith.constant 0 : index
    %c0_3 = arith.constant 0 : index
    %4 = vector.load %arg5[%c0_2, %c0_3] : memref<8x128xf32, #tpu.memory_space<vmem>>, vector<8x128xf32>
    %c0_4 = arith.constant 0 : index
    %c0_5 = arith.constant 0 : index
    %5 = vector.load %arg6[%c0_4, %c0_5] : memref<8x128xf32, #tpu.memory_space<vmem>>, vector<8x128xf32>
    %c0_6 = arith.constant 0 : index
    %c0_7 = arith.constant 0 : index
    %c0_8 = arith.constant 0 : index
    %6 = vector.load %arg2[%c0_6, %c0_7, %c0_8] : memref<8x8x512xbf16, #tpu.memory_space<vmem>>, vector<1x8x512xbf16>
    %7 = vector.shape_cast %6 : vector<1x8x512xbf16> to vector<8x512xbf16>
    %8 = arith.extf %7 : vector<8x512xbf16> to vector<8x512xf32>
    %9 = arith.truncf %4 : vector<8x128xf32> to vector<8x128xbf16>
    %cst = arith.constant dense<0.000000e+00> : vector<8x512xf32>
    %10 = tpu.matmul %9, %3, %cst {dimension_numbers = #tpu.dot_dimension_numbers<[1], [0], [0], [1], [0, 0, 1, 1], [], []>} : vector<8x128xbf16>, vector<128x512xbf16>, vector<8x512xf32> -> vector<8x512xf32>
    %11 = arith.addf %8, %10 : vector<8x512xf32>
    %12 = vector.extract_strided_slice %11 {offsets = [0, 0], sizes = [8, 128], strides = [1, 1]} : vector<8x512xf32> to vector<8x128xf32>
    %13 = arith.negf %12 : vector<8x128xf32>
    %14 = math.exp %13 : vector<8x128xf32>
    %cst_9 = arith.constant 1.000000e+00 : f32
    %15 = vector.broadcast %cst_9 : f32 to vector<8x128xf32>
    %16 = arith.addf %15, %14 : vector<8x128xf32>
    %17 = arith.divf %15, %16 : vector<8x128xf32>
    %18 = vector.extract_strided_slice %11 {offsets = [0, 128], sizes = [8, 128], strides = [1, 1]} : vector<8x512xf32> to vector<8x128xf32>
    %19 = arith.negf %18 : vector<8x128xf32>
    %20 = math.exp %19 : vector<8x128xf32>
    %cst_10 = arith.constant 1.000000e+00 : f32
    %21 = vector.broadcast %cst_10 : f32 to vector<8x128xf32>
    %22 = arith.addf %21, %20 : vector<8x128xf32>
    %23 = arith.divf %21, %22 : vector<8x128xf32>
    %24 = vector.extract_strided_slice %11 {offsets = [0, 256], sizes = [8, 128], strides = [1, 1]} : vector<8x512xf32> to vector<8x128xf32>
    %25 = math.tanh %24 : vector<8x128xf32>
    %26 = vector.extract_strided_slice %11 {offsets = [0, 384], sizes = [8, 128], strides = [1, 1]} : vector<8x512xf32> to vector<8x128xf32>
    %27 = arith.negf %26 : vector<8x128xf32>
    %28 = math.exp %27 : vector<8x128xf32>
    %cst_11 = arith.constant 1.000000e+00 : f32
    %29 = vector.broadcast %cst_11 : f32 to vector<8x128xf32>
    %30 = arith.addf %29, %28 : vector<8x128xf32>
    %31 = arith.divf %29, %30 : vector<8x128xf32>
    %32 = arith.mulf %23, %5 : vector<8x128xf32>
    %33 = arith.mulf %17, %25 : vector<8x128xf32>
    %34 = arith.addf %32, %33 : vector<8x128xf32>
    %35 = math.tanh %34 : vector<8x128xf32>
    %36 = arith.mulf %31, %35 : vector<8x128xf32>
    %c0_12 = arith.constant 0 : index
    %c0_13 = arith.constant 0 : index
    %c0_14 = arith.constant 0 : index
    %37 = vector.load %arg4[%c0_12, %c0_13, %c0_14] : memref<8x8x128xf32, #tpu.memory_space<vmem>>, vector<1x8x128xf32>
    %38 = vector.shape_cast %37 : vector<1x8x128xf32> to vector<8x128xf32>
    %39 = vector.shape_cast %36 : vector<8x128xf32> to vector<1x8x128xf32>
    tpu.vector_store %arg4[%c0_12, %c0_13, %c0_14], %39 {strides = array<i32>} : memref<8x8x128xf32, #tpu.memory_space<vmem>>, vector<1x8x128xf32>,
    %c1 = arith.constant 1 : index
    %c0_15 = arith.constant 0 : index
    %c0_16 = arith.constant 0 : index
    %40 = vector.load %arg2[%c1, %c0_15, %c0_16] : memref<8x8x512xbf16, #tpu.memory_space<vmem>>, vector<1x8x512xbf16>
    %41 = vector.shape_cast %40 : vector<1x8x512xbf16> to vector<8x512xbf16>
    %42 = arith.extf %41 : vector<8x512xbf16> to vector<8x512xf32>
    %43 = arith.truncf %36 : vector<8x128xf32> to vector<8x128xbf16>
    %cst_17 = arith.constant dense<0.000000e+00> : vector<8x512xf32>
    %44 = tpu.matmul %43, %3, %cst_17 {dimension_numbers = #tpu.dot_dimension_numbers<[1], [0], [0], [1], [0, 0, 1, 1], [], []>} : vector<8x128xbf16>, vector<128x512xbf16>, vector<8x512xf32> -> vector<8x512xf32>
    %45 = arith.addf %42, %44 : vector<8x512xf32>
    %46 = vector.extract_strided_slice %45 {offsets = [0, 0], sizes = [8, 128], strides = [1, 1]} : vector<8x512xf32> to vector<8x128xf32>
    %47 = arith.negf %46 : vector<8x128xf32>
    %48 = math.exp %47 : vector<8x128xf32>
    %cst_18 = arith.constant 1.000000e+00 : f32
    %49 = vector.broadcast %cst_18 : f32 to vector<8x128xf32>
    %50 = arith.addf %49, %48 : vector<8x128xf32>
    %51 = arith.divf %49, %50 : vector<8x128xf32>
    %52 = vector.extract_strided_slice %45 {offsets = [0, 128], sizes = [8, 128], strides = [1, 1]} : vector<8x512xf32> to vector<8x128xf32>
    %53 = arith.negf %52 : vector<8x128xf32>
    %54 = math.exp %53 : vector<8x128xf32>
    %cst_19 = arith.constant 1.000000e+00 : f32
    %55 = vector.broadcast %cst_19 : f32 to vector<8x128xf32>
    %56 = arith.addf %55, %54 : vector<8x128xf32>
    %57 = arith.divf %55, %56 : vector<8x128xf32>
    %58 = vector.extract_strided_slice %45 {offsets = [0, 256], sizes = [8, 128], strides = [1, 1]} : vector<8x512xf32> to vector<8x128xf32>
    %59 = math.tanh %58 : vector<8x128xf32>
    %60 = vector.extract_strided_slice %45 {offsets = [0, 384], sizes = [8, 128], strides = [1, 1]} : vector<8x512xf32> to vector<8x128xf32>
    %61 = arith.negf %60 : vector<8x128xf32>
    %62 = math.exp %61 : vector<8x128xf32>
    %cst_20 = arith.constant 1.000000e+00 : f32
    %63 = vector.broadcast %cst_20 : f32 to vector<8x128xf32>
    %64 = arith.addf %63, %62 : vector<8x128xf32>
    %65 = arith.divf %63, %64 : vector<8x128xf32>
    %66 = arith.mulf %57, %34 : vector<8x128xf32>
    %67 = arith.mulf %51, %59 : vector<8x128xf32>
    %68 = arith.addf %66, %67 : vector<8x128xf32>
    %69 = math.tanh %68 : vector<8x128xf32>
    %70 = arith.mulf %65, %69 : vector<8x128xf32>
    %c1_21 = arith.constant 1 : index
    %c0_22 = arith.constant 0 : index
    %c0_23 = arith.constant 0 : index
    %71 = vector.load %arg4[%c1_21, %c0_22, %c0_23] : memref<8x8x128xf32, #tpu.memory_space<vmem>>, vector<1x8x128xf32>
    %72 = vector.shape_cast %71 : vector<1x8x128xf32> to vector<8x128xf32>
    %73 = vector.shape_cast %70 : vector<8x128xf32> to vector<1x8x128xf32>
    tpu.vector_store %arg4[%c1_21, %c0_22, %c0_23], %73 {strides = array<i32>} : memref<8x8x128xf32, #tpu.memory_space<vmem>>, vector<1x8x128xf32>,
    %c2 = arith.constant 2 : index
    %c0_24 = arith.constant 0 : index
    %c0_25 = arith.constant 0 : index
    %74 = vector.load %arg2[%c2, %c0_24, %c0_25] : memref<8x8x512xbf16, #tpu.memory_space<vmem>>, vector<1x8x512xbf16>
    %75 = vector.shape_cast %74 : vector<1x8x512xbf16> to vector<8x512xbf16>
    %76 = arith.extf %75 : vector<8x512xbf16> to vector<8x512xf32>
    %77 = arith.truncf %70 : vector<8x128xf32> to vector<8x128xbf16>
    %cst_26 = arith.constant dense<0.000000e+00> : vector<8x512xf32>
    %78 = tpu.matmul %77, %3, %cst_26 {dimension_numbers = #tpu.dot_dimension_numbers<[1], [0], [0], [1], [0, 0, 1, 1], [], []>} : vector<8x128xbf16>, vector<128x512xbf16>, vector<8x512xf32> -> vector<8x512xf32>
    %79 = arith.addf %76, %78 : vector<8x512xf32>
    %80 = vector.extract_strided_slice %79 {offsets = [0, 0], sizes = [8, 128], strides = [1, 1]} : vector<8x512xf32> to vector<8x128xf32>
    %81 = arith.negf %80 : vector<8x128xf32>
    %82 = math.exp %81 : vector<8x128xf32>
    %cst_27 = arith.constant 1.000000e+00 : f32
    %83 = vector.broadcast %cst_27 : f32 to vector<8x128xf32>
    %84 = arith.addf %83, %82 : vector<8x128xf32>
    %85 = arith.divf %83, %84 : vector<8x128xf32>
    %86 = vector.extract_strided_slice %79 {offsets = [0, 128], sizes = [8, 128], strides = [1, 1]} : vector<8x512xf32> to vector<8x128xf32>
    %87 = arith.negf %86 : vector<8x128xf32>
    %88 = math.exp %87 : vector<8x128xf32>
    %cst_28 = arith.constant 1.000000e+00 : f32
    %89 = vector.broadcast %cst_28 : f32 to vector<8x128xf32>
    %90 = arith.addf %89, %88 : vector<8x128xf32>
    %91 = arith.divf %89, %90 : vector<8x128xf32>
    %92 = vector.extract_strided_slice %79 {offsets = [0, 256], sizes = [8, 128], strides = [1, 1]} : vector<8x512xf32> to vector<8x128xf32>
    %93 = math.tanh %92 : vector<8x128xf32>
    %94 = vector.extract_strided_slice %79 {offsets = [0, 384], sizes = [8, 128], strides = [1, 1]} : vector<8x512xf32> to vector<8x128xf32>
    %95 = arith.negf %94 : vector<8x128xf32>
    %96 = math.exp %95 : vector<8x128xf32>
    %cst_29 = arith.constant 1.000000e+00 : f32
    %97 = vector.broadcast %cst_29 : f32 to vector<8x128xf32>
    %98 = arith.addf %97, %96 : vector<8x128xf32>
    %99 = arith.divf %97, %98 : vector<8x128xf32>
    %100 = arith.mulf %91, %68 : vector<8x128xf32>
    %101 = arith.mulf %85, %93 : vector<8x128xf32>
    %102 = arith.addf %100, %101 : vector<8x128xf32>
    %103 = math.tanh %102 : vector<8x128xf32>
    %104 = arith.mulf %99, %103 : vector<8x128xf32>
    %c2_30 = arith.constant 2 : index
    %c0_31 = arith.constant 0 : index
    %c0_32 = arith.constant 0 : index
    %105 = vector.load %arg4[%c2_30, %c0_31, %c0_32] : memref<8x8x128xf32, #tpu.memory_space<vmem>>, vector<1x8x128xf32>
    %106 = vector.shape_cast %105 : vector<1x8x128xf32> to vector<8x128xf32>
    %107 = vector.shape_cast %104 : vector<8x128xf32> to vector<1x8x128xf32>
    tpu.vector_store %arg4[%c2_30, %c0_31, %c0_32], %107 {strides = array<i32>} : memref<8x8x128xf32, #tpu.memory_space<vmem>>, vector<1x8x128xf32>,
    %c3 = arith.constant 3 : index
    %c0_33 = arith.constant 0 : index
    %c0_34 = arith.constant 0 : index
    %108 = vector.load %arg2[%c3, %c0_33, %c0_34] : memref<8x8x512xbf16, #tpu.memory_space<vmem>>, vector<1x8x512xbf16>
    %109 = vector.shape_cast %108 : vector<1x8x512xbf16> to vector<8x512xbf16>
    %110 = arith.extf %109 : vector<8x512xbf16> to vector<8x512xf32>
    %111 = arith.truncf %104 : vector<8x128xf32> to vector<8x128xbf16>
    %cst_35 = arith.constant dense<0.000000e+00> : vector<8x512xf32>
    %112 = tpu.matmul %111, %3, %cst_35 {dimension_numbers = #tpu.dot_dimension_numbers<[1], [0], [0], [1], [0, 0, 1, 1], [], []>} : vector<8x128xbf16>, vector<128x512xbf16>, vector<8x512xf32> -> vector<8x512xf32>
    %113 = arith.addf %110, %112 : vector<8x512xf32>
    %114 = vector.extract_strided_slice %113 {offsets = [0, 0], sizes = [8, 128], strides = [1, 1]} : vector<8x512xf32> to vector<8x128xf32>
    %115 = arith.negf %114 : vector<8x128xf32>
    %116 = math.exp %115 : vector<8x128xf32>
    %cst_36 = arith.constant 1.000000e+00 : f32
    %117 = vector.broadcast %cst_36 : f32 to vector<8x128xf32>
    %118 = arith.addf %117, %116 : vector<8x128xf32>
    %119 = arith.divf %117, %118 : vector<8x128xf32>
    %120 = vector.extract_strided_slice %113 {offsets = [0, 128], sizes = [8, 128], strides = [1, 1]} : vector<8x512xf32> to vector<8x128xf32>
    %121 = arith.negf %120 : vector<8x128xf32>
    %122 = math.exp %121 : vector<8x128xf32>
    %cst_37 = arith.constant 1.000000e+00 : f32
    %123 = vector.broadcast %cst_37 : f32 to vector<8x128xf32>
    %124 = arith.addf %123, %122 : vector<8x128xf32>
    %125 = arith.divf %123, %124 : vector<8x128xf32>
    %126 = vector.extract_strided_slice %113 {offsets = [0, 256], sizes = [8, 128], strides = [1, 1]} : vector<8x512xf32> to vector<8x128xf32>
    %127 = math.tanh %126 : vector<8x128xf32>
    %128 = vector.extract_strided_slice %113 {offsets = [0, 384], sizes = [8, 128], strides = [1, 1]} : vector<8x512xf32> to vector<8x128xf32>
    %129 = arith.negf %128 : vector<8x128xf32>
    %130 = math.exp %129 : vector<8x128xf32>
    %cst_38 = arith.constant 1.000000e+00 : f32
    %131 = vector.broadcast %cst_38 : f32 to vector<8x128xf32>
    %132 = arith.addf %131, %130 : vector<8x128xf32>
    %133 = arith.divf %131, %132 : vector<8x128xf32>
    %134 = arith.mulf %125, %102 : vector<8x128xf32>
    %135 = arith.mulf %119, %127 : vector<8x128xf32>
    %136 = arith.addf %134, %135 : vector<8x128xf32>
    %137 = math.tanh %136 : vector<8x128xf32>
    %138 = arith.mulf %133, %137 : vector<8x128xf32>
    %c3_39 = arith.constant 3 : index
    %c0_40 = arith.constant 0 : index
    %c0_41 = arith.constant 0 : index
    %139 = vector.load %arg4[%c3_39, %c0_40, %c0_41] : memref<8x8x128xf32, #tpu.memory_space<vmem>>, vector<1x8x128xf32>
    %140 = vector.shape_cast %139 : vector<1x8x128xf32> to vector<8x128xf32>
    %141 = vector.shape_cast %138 : vector<8x128xf32> to vector<1x8x128xf32>
    tpu.vector_store %arg4[%c3_39, %c0_40, %c0_41], %141 {strides = array<i32>} : memref<8x8x128xf32, #tpu.memory_space<vmem>>, vector<1x8x128xf32>,
    %c4 = arith.constant 4 : index
    %c0_42 = arith.constant 0 : index
    %c0_43 = arith.constant 0 : index
    %142 = vector.load %arg2[%c4, %c0_42, %c0_43] : memref<8x8x512xbf16, #tpu.memory_space<vmem>>, vector<1x8x512xbf16>
    %143 = vector.shape_cast %142 : vector<1x8x512xbf16> to vector<8x512xbf16>
    %144 = arith.extf %143 : vector<8x512xbf16> to vector<8x512xf32>
    %145 = arith.truncf %138 : vector<8x128xf32> to vector<8x128xbf16>
    %cst_44 = arith.constant dense<0.000000e+00> : vector<8x512xf32>
    %146 = tpu.matmul %145, %3, %cst_44 {dimension_numbers = #tpu.dot_dimension_numbers<[1], [0], [0], [1], [0, 0, 1, 1], [], []>} : vector<8x128xbf16>, vector<128x512xbf16>, vector<8x512xf32> -> vector<8x512xf32>
    %147 = arith.addf %144, %146 : vector<8x512xf32>
    %148 = vector.extract_strided_slice %147 {offsets = [0, 0], sizes = [8, 128], strides = [1, 1]} : vector<8x512xf32> to vector<8x128xf32>
    %149 = arith.negf %148 : vector<8x128xf32>
    %150 = math.exp %149 : vector<8x128xf32>
    %cst_45 = arith.constant 1.000000e+00 : f32
    %151 = vector.broadcast %cst_45 : f32 to vector<8x128xf32>
    %152 = arith.addf %151, %150 : vector<8x128xf32>
    %153 = arith.divf %151, %152 : vector<8x128xf32>
    %154 = vector.extract_strided_slice %147 {offsets = [0, 128], sizes = [8, 128], strides = [1, 1]} : vector<8x512xf32> to vector<8x128xf32>
    %155 = arith.negf %154 : vector<8x128xf32>
    %156 = math.exp %155 : vector<8x128xf32>
    %cst_46 = arith.constant 1.000000e+00 : f32
    %157 = vector.broadcast %cst_46 : f32 to vector<8x128xf32>
    %158 = arith.addf %157, %156 : vector<8x128xf32>
    %159 = arith.divf %157, %158 : vector<8x128xf32>
    %160 = vector.extract_strided_slice %147 {offsets = [0, 256], sizes = [8, 128], strides = [1, 1]} : vector<8x512xf32> to vector<8x128xf32>
    %161 = math.tanh %160 : vector<8x128xf32>
    %162 = vector.extract_strided_slice %147 {offsets = [0, 384], sizes = [8, 128], strides = [1, 1]} : vector<8x512xf32> to vector<8x128xf32>
    %163 = arith.negf %162 : vector<8x128xf32>
    %164 = math.exp %163 : vector<8x128xf32>
    %cst_47 = arith.constant 1.000000e+00 : f32
    %165 = vector.broadcast %cst_47 : f32 to vector<8x128xf32>
    %166 = arith.addf %165, %164 : vector<8x128xf32>
    %167 = arith.divf %165, %166 : vector<8x128xf32>
    %168 = arith.mulf %159, %136 : vector<8x128xf32>
    %169 = arith.mulf %153, %161 : vector<8x128xf32>
    %170 = arith.addf %168, %169 : vector<8x128xf32>
    %171 = math.tanh %170 : vector<8x128xf32>
    %172 = arith.mulf %167, %171 : vector<8x128xf32>
    %c4_48 = arith.constant 4 : index
    %c0_49 = arith.constant 0 : index
    %c0_50 = arith.constant 0 : index
    %173 = vector.load %arg4[%c4_48, %c0_49, %c0_50] : memref<8x8x128xf32, #tpu.memory_space<vmem>>, vector<1x8x128xf32>
    %174 = vector.shape_cast %173 : vector<1x8x128xf32> to vector<8x128xf32>
    %175 = vector.shape_cast %172 : vector<8x128xf32> to vector<1x8x128xf32>
    tpu.vector_store %arg4[%c4_48, %c0_49, %c0_50], %175 {strides = array<i32>} : memref<8x8x128xf32, #tpu.memory_space<vmem>>, vector<1x8x128xf32>,
    %c5 = arith.constant 5 : index
    %c0_51 = arith.constant 0 : index
    %c0_52 = arith.constant 0 : index
    %176 = vector.load %arg2[%c5, %c0_51, %c0_52] : memref<8x8x512xbf16, #tpu.memory_space<vmem>>, vector<1x8x512xbf16>
    %177 = vector.shape_cast %176 : vector<1x8x512xbf16> to vector<8x512xbf16>
    %178 = arith.extf %177 : vector<8x512xbf16> to vector<8x512xf32>
    %179 = arith.truncf %172 : vector<8x128xf32> to vector<8x128xbf16>
    %cst_53 = arith.constant dense<0.000000e+00> : vector<8x512xf32>
    %180 = tpu.matmul %179, %3, %cst_53 {dimension_numbers = #tpu.dot_dimension_numbers<[1], [0], [0], [1], [0, 0, 1, 1], [], []>} : vector<8x128xbf16>, vector<128x512xbf16>, vector<8x512xf32> -> vector<8x512xf32>
    %181 = arith.addf %178, %180 : vector<8x512xf32>
    %182 = vector.extract_strided_slice %181 {offsets = [0, 0], sizes = [8, 128], strides = [1, 1]} : vector<8x512xf32> to vector<8x128xf32>
    %183 = arith.negf %182 : vector<8x128xf32>
    %184 = math.exp %183 : vector<8x128xf32>
    %cst_54 = arith.constant 1.000000e+00 : f32
    %185 = vector.broadcast %cst_54 : f32 to vector<8x128xf32>
    %186 = arith.addf %185, %184 : vector<8x128xf32>
    %187 = arith.divf %185, %186 : vector<8x128xf32>
    %188 = vector.extract_strided_slice %181 {offsets = [0, 128], sizes = [8, 128], strides = [1, 1]} : vector<8x512xf32> to vector<8x128xf32>
    %189 = arith.negf %188 : vector<8x128xf32>
    %190 = math.exp %189 : vector<8x128xf32>
    %cst_55 = arith.constant 1.000000e+00 : f32
    %191 = vector.broadcast %cst_55 : f32 to vector<8x128xf32>
    %192 = arith.addf %191, %190 : vector<8x128xf32>
    %193 = arith.divf %191, %192 : vector<8x128xf32>
    %194 = vector.extract_strided_slice %181 {offsets = [0, 256], sizes = [8, 128], strides = [1, 1]} : vector<8x512xf32> to vector<8x128xf32>
    %195 = math.tanh %194 : vector<8x128xf32>
    %196 = vector.extract_strided_slice %181 {offsets = [0, 384], sizes = [8, 128], strides = [1, 1]} : vector<8x512xf32> to vector<8x128xf32>
    %197 = arith.negf %196 : vector<8x128xf32>
    %198 = math.exp %197 : vector<8x128xf32>
    %cst_56 = arith.constant 1.000000e+00 : f32
    %199 = vector.broadcast %cst_56 : f32 to vector<8x128xf32>
    %200 = arith.addf %199, %198 : vector<8x128xf32>
    %201 = arith.divf %199, %200 : vector<8x128xf32>
    %202 = arith.mulf %193, %170 : vector<8x128xf32>
    %203 = arith.mulf %187, %195 : vector<8x128xf32>
    %204 = arith.addf %202, %203 : vector<8x128xf32>
    %205 = math.tanh %204 : vector<8x128xf32>
    %206 = arith.mulf %201, %205 : vector<8x128xf32>
    %c5_57 = arith.constant 5 : index
    %c0_58 = arith.constant 0 : index
    %c0_59 = arith.constant 0 : index
    %207 = vector.load %arg4[%c5_57, %c0_58, %c0_59] : memref<8x8x128xf32, #tpu.memory_space<vmem>>, vector<1x8x128xf32>
    %208 = vector.shape_cast %207 : vector<1x8x128xf32> to vector<8x128xf32>
    %209 = vector.shape_cast %206 : vector<8x128xf32> to vector<1x8x128xf32>
    tpu.vector_store %arg4[%c5_57, %c0_58, %c0_59], %209 {strides = array<i32>} : memref<8x8x128xf32, #tpu.memory_space<vmem>>, vector<1x8x128xf32>,
    %c6 = arith.constant 6 : index
    %c0_60 = arith.constant 0 : index
    %c0_61 = arith.constant 0 : index
    %210 = vector.load %arg2[%c6, %c0_60, %c0_61] : memref<8x8x512xbf16, #tpu.memory_space<vmem>>, vector<1x8x512xbf16>
    %211 = vector.shape_cast %210 : vector<1x8x512xbf16> to vector<8x512xbf16>
    %212 = arith.extf %211 : vector<8x512xbf16> to vector<8x512xf32>
    %213 = arith.truncf %206 : vector<8x128xf32> to vector<8x128xbf16>
    %cst_62 = arith.constant dense<0.000000e+00> : vector<8x512xf32>
    %214 = tpu.matmul %213, %3, %cst_62 {dimension_numbers = #tpu.dot_dimension_numbers<[1], [0], [0], [1], [0, 0, 1, 1], [], []>} : vector<8x128xbf16>, vector<128x512xbf16>, vector<8x512xf32> -> vector<8x512xf32>
    %215 = arith.addf %212, %214 : vector<8x512xf32>
    %216 = vector.extract_strided_slice %215 {offsets = [0, 0], sizes = [8, 128], strides = [1, 1]} : vector<8x512xf32> to vector<8x128xf32>
    %217 = arith.negf %216 : vector<8x128xf32>
    %218 = math.exp %217 : vector<8x128xf32>
    %cst_63 = arith.constant 1.000000e+00 : f32
    %219 = vector.broadcast %cst_63 : f32 to vector<8x128xf32>
    %220 = arith.addf %219, %218 : vector<8x128xf32>
    %221 = arith.divf %219, %220 : vector<8x128xf32>
    %222 = vector.extract_strided_slice %215 {offsets = [0, 128], sizes = [8, 128], strides = [1, 1]} : vector<8x512xf32> to vector<8x128xf32>
    %223 = arith.negf %222 : vector<8x128xf32>
    %224 = math.exp %223 : vector<8x128xf32>
    %cst_64 = arith.constant 1.000000e+00 : f32
    %225 = vector.broadcast %cst_64 : f32 to vector<8x128xf32>
    %226 = arith.addf %225, %224 : vector<8x128xf32>
    %227 = arith.divf %225, %226 : vector<8x128xf32>
    %228 = vector.extract_strided_slice %215 {offsets = [0, 256], sizes = [8, 128], strides = [1, 1]} : vector<8x512xf32> to vector<8x128xf32>
    %229 = math.tanh %228 : vector<8x128xf32>
    %230 = vector.extract_strided_slice %215 {offsets = [0, 384], sizes = [8, 128], strides = [1, 1]} : vector<8x512xf32> to vector<8x128xf32>
    %231 = arith.negf %230 : vector<8x128xf32>
    %232 = math.exp %231 : vector<8x128xf32>
    %cst_65 = arith.constant 1.000000e+00 : f32
    %233 = vector.broadcast %cst_65 : f32 to vector<8x128xf32>
    %234 = arith.addf %233, %232 : vector<8x128xf32>
    %235 = arith.divf %233, %234 : vector<8x128xf32>
    %236 = arith.mulf %227, %204 : vector<8x128xf32>
    %237 = arith.mulf %221, %229 : vector<8x128xf32>
    %238 = arith.addf %236, %237 : vector<8x128xf32>
    %239 = math.tanh %238 : vector<8x128xf32>
    %240 = arith.mulf %235, %239 : vector<8x128xf32>
    %c6_66 = arith.constant 6 : index
    %c0_67 = arith.constant 0 : index
    %c0_68 = arith.constant 0 : index
    %241 = vector.load %arg4[%c6_66, %c0_67, %c0_68] : memref<8x8x128xf32, #tpu.memory_space<vmem>>, vector<1x8x128xf32>
    %242 = vector.shape_cast %241 : vector<1x8x128xf32> to vector<8x128xf32>
    %243 = vector.shape_cast %240 : vector<8x128xf32> to vector<1x8x128xf32>
    tpu.vector_store %arg4[%c6_66, %c0_67, %c0_68], %243 {strides = array<i32>} : memref<8x8x128xf32, #tpu.memory_space<vmem>>, vector<1x8x128xf32>,
    %c7 = arith.constant 7 : index
    %c0_69 = arith.constant 0 : index
    %c0_70 = arith.constant 0 : index
    %244 = vector.load %arg2[%c7, %c0_69, %c0_70] : memref<8x8x512xbf16, #tpu.memory_space<vmem>>, vector<1x8x512xbf16>
    %245 = vector.shape_cast %244 : vector<1x8x512xbf16> to vector<8x512xbf16>
    %246 = arith.extf %245 : vector<8x512xbf16> to vector<8x512xf32>
    %247 = arith.truncf %240 : vector<8x128xf32> to vector<8x128xbf16>
    %cst_71 = arith.constant dense<0.000000e+00> : vector<8x512xf32>
    %248 = tpu.matmul %247, %3, %cst_71 {dimension_numbers = #tpu.dot_dimension_numbers<[1], [0], [0], [1], [0, 0, 1, 1], [], []>} : vector<8x128xbf16>, vector<128x512xbf16>, vector<8x512xf32> -> vector<8x512xf32>
    %249 = arith.addf %246, %248 : vector<8x512xf32>
    %250 = vector.extract_strided_slice %249 {offsets = [0, 0], sizes = [8, 128], strides = [1, 1]} : vector<8x512xf32> to vector<8x128xf32>
    %251 = arith.negf %250 : vector<8x128xf32>
    %252 = math.exp %251 : vector<8x128xf32>
    %cst_72 = arith.constant 1.000000e+00 : f32
    %253 = vector.broadcast %cst_72 : f32 to vector<8x128xf32>
    %254 = arith.addf %253, %252 : vector<8x128xf32>
    %255 = arith.divf %253, %254 : vector<8x128xf32>
    %256 = vector.extract_strided_slice %249 {offsets = [0, 128], sizes = [8, 128], strides = [1, 1]} : vector<8x512xf32> to vector<8x128xf32>
    %257 = arith.negf %256 : vector<8x128xf32>
    %258 = math.exp %257 : vector<8x128xf32>
    %cst_73 = arith.constant 1.000000e+00 : f32
    %259 = vector.broadcast %cst_73 : f32 to vector<8x128xf32>
    %260 = arith.addf %259, %258 : vector<8x128xf32>
    %261 = arith.divf %259, %260 : vector<8x128xf32>
    %262 = vector.extract_strided_slice %249 {offsets = [0, 256], sizes = [8, 128], strides = [1, 1]} : vector<8x512xf32> to vector<8x128xf32>
    %263 = math.tanh %262 : vector<8x128xf32>
    %264 = vector.extract_strided_slice %249 {offsets = [0, 384], sizes = [8, 128], strides = [1, 1]} : vector<8x512xf32> to vector<8x128xf32>
    %265 = arith.negf %264 : vector<8x128xf32>
    %266 = math.exp %265 : vector<8x128xf32>
    %cst_74 = arith.constant 1.000000e+00 : f32
    %267 = vector.broadcast %cst_74 : f32 to vector<8x128xf32>
    %268 = arith.addf %267, %266 : vector<8x128xf32>
    %269 = arith.divf %267, %268 : vector<8x128xf32>
    %270 = arith.mulf %261, %238 : vector<8x128xf32>
    %271 = arith.mulf %255, %263 : vector<8x128xf32>
    %272 = arith.addf %270, %271 : vector<8x128xf32>
    %273 = math.tanh %272 : vector<8x128xf32>
    %274 = arith.mulf %269, %273 : vector<8x128xf32>
    %c7_75 = arith.constant 7 : index
    %c0_76 = arith.constant 0 : index
    %c0_77 = arith.constant 0 : index
    %275 = vector.load %arg4[%c7_75, %c0_76, %c0_77] : memref<8x8x128xf32, #tpu.memory_space<vmem>>, vector<1x8x128xf32>
    %276 = vector.shape_cast %275 : vector<1x8x128xf32> to vector<8x128xf32>
    %277 = vector.shape_cast %274 : vector<8x128xf32> to vector<1x8x128xf32>
    tpu.vector_store %arg4[%c7_75, %c0_76, %c0_77], %277 {strides = array<i32>} : memref<8x8x128xf32, #tpu.memory_space<vmem>>, vector<1x8x128xf32>,
    %c0_78 = arith.constant 0 : index
    %c0_79 = arith.constant 0 : index
    %278 = vector.load %arg5[%c0_78, %c0_79] : memref<8x128xf32, #tpu.memory_space<vmem>>, vector<8x128xf32>
    tpu.vector_store %arg5[%c0_78, %c0_79], %274 {strides = array<i32>} : memref<8x128xf32, #tpu.memory_space<vmem>>, vector<8x128xf32>,
    %c0_80 = arith.constant 0 : index
    %c0_81 = arith.constant 0 : index
    %279 = vector.load %arg6[%c0_80, %c0_81] : memref<8x128xf32, #tpu.memory_space<vmem>>, vector<8x128xf32>
    tpu.vector_store %arg6[%c0_80, %c0_81], %272 {strides = array<i32>} : memref<8x128xf32, #tpu.memory_space<vmem>>, vector<8x128xf32>,
    return
  }
  func.func @transform_0(%arg0: i32, %arg1: i32) -> (i32, i32, i32) {
    %c0_i32 = arith.constant 0 : i32
    %c0_i32_0 = arith.constant 0 : i32
    return %arg1, %arg0, %c0_i32 : i32, i32, i32
  }
  func.func @transform_1(%arg0: i32, %arg1: i32) -> (i32, i32) {
    %c0_i32 = arith.constant 0 : i32
    %c0_i32_0 = arith.constant 0 : i32
    %c0_i32_1 = arith.constant 0 : i32
    return %c0_i32, %c0_i32_0 : i32, i32
  }
  func.func @transform_2(%arg0: i32, %arg1: i32) -> (i32, i32, i32) {
    %c0_i32 = arith.constant 0 : i32
    %c0_i32_0 = arith.constant 0 : i32
    return %arg1, %arg0, %c0_i32 : i32, i32, i32
  }
}

module attributes {stable_mosaic.version = 11 : i64} {
  func.func @_matmul_bias_kernel(%arg0: i32, %arg1: i32, %arg2: memref<64x128xf32, #tpu.memory_space<vmem>>, %arg3: memref<128x128xbf16, #tpu.memory_space<vmem>>, %arg4: memref<1x128xf32, #tpu.memory_space<vmem>>, %arg5: memref<64x128xf32, #tpu.memory_space<vmem>>, %arg6: memref<64x128xf32, #tpu.memory_space<vmem>>) attributes {dimension_semantics = [#tpu.dimension_semantics<parallel>, #tpu.dimension_semantics<arbitrary>], iteration_bounds = array<i64: 1, 1>, scalar_prefetch = 0 : i64, scratch_operands = 1 : i64, tpu.core_type = #tpu.core_type<tc>, window_params = [{transform_indices = @transform_0, window_bounds = array<i64: 64, 128>}, {transform_indices = @transform_1, window_bounds = array<i64: 128, 128>}, {pipeline_mode = #tpu.pipeline_mode<synchronous>, transform_indices = @transform_2, window_bounds = array<i64: 1, 128>}, {transform_indices = @transform_3, window_bounds = array<i64: 64, 128>}]} {
    %c0_i32 = arith.constant 0 : i32
    %0 = arith.cmpi eq, %arg1, %c0_i32 : i32
    %1 = arith.extui %0 : i1 to i32
    %c0_i32_0 = arith.constant 0 : i32
    %2 = arith.cmpi ne, %1, %c0_i32_0 : i32
    scf.if %2 {
      %cst_10 = arith.constant 0.000000e+00 : f32
      %13 = vector.broadcast %cst_10 : f32 to vector<64x128xf32>
      %c0_11 = arith.constant 0 : index
      %c0_12 = arith.constant 0 : index
      %14 = vector.load %arg6[%c0_11, %c0_12] : memref<64x128xf32, #tpu.memory_space<vmem>>, vector<64x128xf32>
      tpu.vector_store %arg6[%c0_11, %c0_12], %13 {strides = array<i32>} : memref<64x128xf32, #tpu.memory_space<vmem>>, vector<64x128xf32>,
    } else {
    }
    %c0 = arith.constant 0 : index
    %c0_1 = arith.constant 0 : index
    %3 = vector.load %arg6[%c0, %c0_1] : memref<64x128xf32, #tpu.memory_space<vmem>>, vector<64x128xf32>
    %c0_2 = arith.constant 0 : index
    %c0_3 = arith.constant 0 : index
    %4 = vector.load %arg2[%c0_2, %c0_3] : memref<64x128xf32, #tpu.memory_space<vmem>>, vector<64x128xf32>
    %5 = arith.truncf %4 : vector<64x128xf32> to vector<64x128xbf16>
    %c0_4 = arith.constant 0 : index
    %c0_5 = arith.constant 0 : index
    %6 = vector.load %arg3[%c0_4, %c0_5] : memref<128x128xbf16, #tpu.memory_space<vmem>>, vector<128x128xbf16>
    %cst = arith.constant dense<0.000000e+00> : vector<64x128xf32>
    %7 = tpu.matmul %5, %6, %cst {dimension_numbers = #tpu.dot_dimension_numbers<[1], [0], [0], [1], [0, 0, 1, 1], [], []>} : vector<64x128xbf16>, vector<128x128xbf16>, vector<64x128xf32> -> vector<64x128xf32>
    %8 = arith.addf %3, %7 : vector<64x128xf32>
    %c0_6 = arith.constant 0 : index
    %c0_7 = arith.constant 0 : index
    %9 = vector.load %arg6[%c0_6, %c0_7] : memref<64x128xf32, #tpu.memory_space<vmem>>, vector<64x128xf32>
    tpu.vector_store %arg6[%c0_6, %c0_7], %8 {strides = array<i32>} : memref<64x128xf32, #tpu.memory_space<vmem>>, vector<64x128xf32>,
    %c0_i32_8 = arith.constant 0 : i32
    %10 = arith.cmpi eq, %arg1, %c0_i32_8 : i32
    %11 = arith.extui %10 : i1 to i32
    %c0_i32_9 = arith.constant 0 : i32
    %12 = arith.cmpi ne, %11, %c0_i32_9 : i32
    scf.if %12 {
      %c0_10 = arith.constant 0 : index
      %c0_11 = arith.constant 0 : index
      %13 = vector.load %arg6[%c0_10, %c0_11] : memref<64x128xf32, #tpu.memory_space<vmem>>, vector<64x128xf32>
      %c0_12 = arith.constant 0 : index
      %c0_13 = arith.constant 0 : index
      %14 = vector.load %arg4[%c0_12, %c0_13] : memref<1x128xf32, #tpu.memory_space<vmem>>, vector<1x128xf32>
      %15 = vector.broadcast %14 : vector<1x128xf32> to vector<64x128xf32>
      %16 = arith.addf %13, %15 : vector<64x128xf32>
      %c0_14 = arith.constant 0 : index
      %c0_15 = arith.constant 0 : index
      %17 = vector.load %arg5[%c0_14, %c0_15] : memref<64x128xf32, #tpu.memory_space<vmem>>, vector<64x128xf32>
      tpu.vector_store %arg5[%c0_14, %c0_15], %16 {strides = array<i32>} : memref<64x128xf32, #tpu.memory_space<vmem>>, vector<64x128xf32>,
    } else {
    }
    return
  }
  func.func @transform_0(%arg0: i32, %arg1: i32) -> (i32, i32) {
    %c0_i32 = arith.constant 0 : i32
    return %arg0, %arg1 : i32, i32
  }
  func.func @transform_1(%arg0: i32, %arg1: i32) -> (i32, i32) {
    %c0_i32 = arith.constant 0 : i32
    %c0_i32_0 = arith.constant 0 : i32
    return %arg1, %c0_i32 : i32, i32
  }
  func.func @transform_2(%arg0: i32, %arg1: i32) -> (i32, i32) {
    %c0_i32 = arith.constant 0 : i32
    %c0_i32_0 = arith.constant 0 : i32
    %c0_i32_1 = arith.constant 0 : i32
    return %c0_i32, %c0_i32_0 : i32, i32
  }
  func.func @transform_3(%arg0: i32, %arg1: i32) -> (i32, i32) {
    %c0_i32 = arith.constant 0 : i32
    %c0_i32_0 = arith.constant 0 : i32
    return %arg0, %c0_i32 : i32, i32
  }
}

module attributes {stable_mosaic.version = 11 : i64} {
  func.func @_matmul_bias_kernel(%arg0: i32, %arg1: i32, %arg2: memref<64x128xf32, #tpu.memory_space<vmem>>, %arg3: memref<128x512xbf16, #tpu.memory_space<vmem>>, %arg4: memref<1x512xf32, #tpu.memory_space<vmem>>, %arg5: memref<64x512xbf16, #tpu.memory_space<vmem>>, %arg6: memref<64x512xf32, #tpu.memory_space<vmem>>) attributes {dimension_semantics = [#tpu.dimension_semantics<parallel>, #tpu.dimension_semantics<arbitrary>], iteration_bounds = array<i64: 1, 1>, scalar_prefetch = 0 : i64, scratch_operands = 1 : i64, tpu.core_type = #tpu.core_type<tc>, window_params = [{transform_indices = @transform_0, window_bounds = array<i64: 64, 128>}, {transform_indices = @transform_1, window_bounds = array<i64: 128, 512>}, {pipeline_mode = #tpu.pipeline_mode<synchronous>, transform_indices = @transform_2, window_bounds = array<i64: 1, 512>}, {transform_indices = @transform_3, window_bounds = array<i64: 64, 512>}]} {
    %c0_i32 = arith.constant 0 : i32
    %0 = arith.cmpi eq, %arg1, %c0_i32 : i32
    %1 = arith.extui %0 : i1 to i32
    %c0_i32_0 = arith.constant 0 : i32
    %2 = arith.cmpi ne, %1, %c0_i32_0 : i32
    scf.if %2 {
      %cst_10 = arith.constant 0.000000e+00 : f32
      %13 = vector.broadcast %cst_10 : f32 to vector<64x512xf32>
      %c0_11 = arith.constant 0 : index
      %c0_12 = arith.constant 0 : index
      %14 = vector.load %arg6[%c0_11, %c0_12] : memref<64x512xf32, #tpu.memory_space<vmem>>, vector<64x512xf32>
      tpu.vector_store %arg6[%c0_11, %c0_12], %13 {strides = array<i32>} : memref<64x512xf32, #tpu.memory_space<vmem>>, vector<64x512xf32>,
    } else {
    }
    %c0 = arith.constant 0 : index
    %c0_1 = arith.constant 0 : index
    %3 = vector.load %arg6[%c0, %c0_1] : memref<64x512xf32, #tpu.memory_space<vmem>>, vector<64x512xf32>
    %c0_2 = arith.constant 0 : index
    %c0_3 = arith.constant 0 : index
    %4 = vector.load %arg2[%c0_2, %c0_3] : memref<64x128xf32, #tpu.memory_space<vmem>>, vector<64x128xf32>
    %5 = arith.truncf %4 : vector<64x128xf32> to vector<64x128xbf16>
    %c0_4 = arith.constant 0 : index
    %c0_5 = arith.constant 0 : index
    %6 = vector.load %arg3[%c0_4, %c0_5] : memref<128x512xbf16, #tpu.memory_space<vmem>>, vector<128x512xbf16>
    %cst = arith.constant dense<0.000000e+00> : vector<64x512xf32>
    %7 = tpu.matmul %5, %6, %cst {dimension_numbers = #tpu.dot_dimension_numbers<[1], [0], [0], [1], [0, 0, 1, 1], [], []>} : vector<64x128xbf16>, vector<128x512xbf16>, vector<64x512xf32> -> vector<64x512xf32>
    %8 = arith.addf %3, %7 : vector<64x512xf32>
    %c0_6 = arith.constant 0 : index
    %c0_7 = arith.constant 0 : index
    %9 = vector.load %arg6[%c0_6, %c0_7] : memref<64x512xf32, #tpu.memory_space<vmem>>, vector<64x512xf32>
    tpu.vector_store %arg6[%c0_6, %c0_7], %8 {strides = array<i32>} : memref<64x512xf32, #tpu.memory_space<vmem>>, vector<64x512xf32>,
    %c0_i32_8 = arith.constant 0 : i32
    %10 = arith.cmpi eq, %arg1, %c0_i32_8 : i32
    %11 = arith.extui %10 : i1 to i32
    %c0_i32_9 = arith.constant 0 : i32
    %12 = arith.cmpi ne, %11, %c0_i32_9 : i32
    scf.if %12 {
      %c0_10 = arith.constant 0 : index
      %c0_11 = arith.constant 0 : index
      %13 = vector.load %arg6[%c0_10, %c0_11] : memref<64x512xf32, #tpu.memory_space<vmem>>, vector<64x512xf32>
      %c0_12 = arith.constant 0 : index
      %c0_13 = arith.constant 0 : index
      %14 = vector.load %arg4[%c0_12, %c0_13] : memref<1x512xf32, #tpu.memory_space<vmem>>, vector<1x512xf32>
      %15 = vector.broadcast %14 : vector<1x512xf32> to vector<64x512xf32>
      %16 = arith.addf %13, %15 : vector<64x512xf32>
      %17 = arith.truncf %16 : vector<64x512xf32> to vector<64x512xbf16>
      %c0_14 = arith.constant 0 : index
      %c0_15 = arith.constant 0 : index
      %18 = vector.load %arg5[%c0_14, %c0_15] : memref<64x512xbf16, #tpu.memory_space<vmem>>, vector<64x512xbf16>
      tpu.vector_store %arg5[%c0_14, %c0_15], %17 {strides = array<i32>} : memref<64x512xbf16, #tpu.memory_space<vmem>>, vector<64x512xbf16>,
    } else {
    }
    return
  }
  func.func @transform_0(%arg0: i32, %arg1: i32) -> (i32, i32) {
    %c0_i32 = arith.constant 0 : i32
    return %arg0, %arg1 : i32, i32
  }
  func.func @transform_1(%arg0: i32, %arg1: i32) -> (i32, i32) {
    %c0_i32 = arith.constant 0 : i32
    %c0_i32_0 = arith.constant 0 : i32
    return %arg1, %c0_i32 : i32, i32
  }
  func.func @transform_2(%arg0: i32, %arg1: i32) -> (i32, i32) {
    %c0_i32 = arith.constant 0 : i32
    %c0_i32_0 = arith.constant 0 : i32
    %c0_i32_1 = arith.constant 0 : i32
    return %c0_i32, %c0_i32_0 : i32, i32
  }
  func.func @transform_3(%arg0: i32, %arg1: i32) -> (i32, i32) {
    %c0_i32 = arith.constant 0 : i32
    %c0_i32_0 = arith.constant 0 : i32
    return %arg0, %c0_i32 : i32, i32
  }
}

</mosaic_0001>

<bundles_post_ra>
// kernel: rnn_forward.9
= control target key start
LH: loop header
LB: loop body
LE: loop exit
PB: predicated region body
PF: predicated region fallthrough
CT: control target
= control target key end

     0   :  { %s394_s1 = inlined_call_operand.vmem [shape: bf16[128,128], index: 1, kind: input, shape index: {}]   ;;  %s395_s0 = inlined_call_operand.vmem [shape: f32[64,128], index: 0, kind: input, shape index: {}]   ;;  %s396_s2 = inlined_call_operand.vmem [shape: f32[1,128], index: 2, kind: input, shape index: {}]   ;;  %s397_s3 = inlined_call_operand.vmem [shape: f32[64,128], index: 3, kind: output, shape index: {}]  }
   0x1   :  { %v291_v0 = vld [vmem:[%s394_s1] sm:$0xff]   ;;  %v292_v1 = vld [vmem:[%s394_s1 + $0x8] sm:$0xff]   ;;  %v293_v2 = vld [vmem:[%s394_s1 + $0x10] sm:$0xff]  }
   0x2   :  { %251 = vmatprep.subr.bf16.mxu0 %v291_v0  ;;  %275 = vmatprep.subr.bf16.mxu1 %v291_v0  ;;  %v294_v3 = vld [vmem:[%s394_s1 + $0x18] sm:$0xff]   ;;  %v35_v4 = vld [vmem:[%s395_s0] sm:$0xff]  ;;  %v36_v5 = vld [vmem:[%s395_s0 + $0x8] sm:$0xff] }
   0x3   :  { %252 = vmatpush3.bf16.msra.mxu0 %v291_v0  ;;  %283 = vmatpush3.bf16.msra.mxu1 %v291_v0  ;;  %v39_v6 = vld [vmem:[%s395_s0 + $0x20] sm:$0xff]  ;;  %v43_v7 = vpack.c.bf16 %v36_v5, %v35_v4  ;;  %v40_v8 = vld [vmem:[%s395_s0 + $0x28] sm:$0xff]  ;;  %v297_v12 = vld [vmem:[%s394_s1 + $0x30] sm:$0xff]  }
   0x4   :  { %253 = vmatprep.subr.bf16.mxu0 %v292_v1  ;;  %276 = vmatprep.subr.bf16.mxu1 %v292_v1  ;;  %v45_v9 = vpack.c.bf16 %v40_v8, %v39_v6  ;;  %v295_v10 = vld [vmem:[%s394_s1 + $0x20] sm:$0xff]   ;;  %v296_v11 = vld [vmem:[%s394_s1 + $0x28] sm:$0xff]   ;;  %v298_v13 = vld [vmem:[%s394_s1 + $0x38] sm:$0xff]  }
   0x5   :  { %267 = vmatprep.mubr.bf16.mxu0 %v43_v7  ;;  %v37_v14 = vld [vmem:[%s395_s0 + $0x10] sm:$0xff]  ;;  %v38_v15 = vld [vmem:[%s395_s0 + $0x18] sm:$0xff]  ;;  %v238_v20 = vld [vmem:[%s396_s2] ss:$0 sm:$0xff] }
   0x6   :  { %271 = vmatprep.mubr.bf16.mxu1 %v45_v9  ;;  %v41_v16 = vld [vmem:[%s395_s0 + $0x30] sm:$0xff]  ;;  %v42_v17 = vld [vmem:[%s395_s0 + $0x38] sm:$0xff]  ;;  %v44_v18 = vpack.c.bf16 %v38_v15, %v37_v14 }
   0x7   :  { %254 = vmatpush3.bf16.msra.mxu0 %v292_v1  ;;  %284 = vmatpush3.bf16.msra.mxu1 %v292_v1  ;;  %v46_v19 = vpack.c.bf16 %v42_v17, %v41_v16 }
   0x8   :  { %255 = vmatprep.subr.bf16.mxu0 %v293_v2  ;;  %277 = vmatprep.subr.bf16.mxu1 %v293_v2 }
   0xb   :  { %256 = vmatpush3.bf16.msra.mxu0 %v293_v2  ;;  %285 = vmatpush3.bf16.msra.mxu1 %v293_v2 }
   0xc   :  { %257 = vmatprep.subr.bf16.mxu0 %v294_v3  ;;  %278 = vmatprep.subr.bf16.mxu1 %v294_v3 }
   0xf   :  { %258 = vmatpush3.bf16.msra.mxu0 %v294_v3  ;;  %286 = vmatpush3.bf16.msra.mxu1 %v294_v3 }
  0x10   :  { %259 = vmatprep.subr.bf16.mxu0 %v295_v10  ;;  %279 = vmatprep.subr.bf16.mxu1 %v295_v10 }
  0x13   :  { %260 = vmatpush3.bf16.msra.mxu0 %v295_v10  ;;  %287 = vmatpush3.bf16.msra.mxu1 %v295_v10 }
  0x14   :  { %261 = vmatprep.subr.bf16.mxu0 %v296_v11  ;;  %280 = vmatprep.subr.bf16.mxu1 %v296_v11 }
  0x17   :  { %262 = vmatpush3.bf16.msra.mxu0 %v296_v11  ;;  %288 = vmatpush3.bf16.msra.mxu1 %v296_v11 }
  0x18   :  { %263 = vmatprep.subr.bf16.mxu0 %v297_v12  ;;  %281 = vmatprep.subr.bf16.mxu1 %v297_v12 }
  0x1b   :  { %264 = vmatpush3.bf16.msra.mxu0 %v297_v12  ;;  %289 = vmatpush3.bf16.msra.mxu1 %v297_v12 }
  0x1c   :  { %265 = vmatprep.subr.bf16.mxu0 %v298_v13  ;;  %282 = vmatprep.subr.bf16.mxu1 %v298_v13 }
  0x1f   :  { %266 = vmatpush3.bf16.msra.mxu0 %v298_v13  ;;  %290 = vmatpush3.bf16.msra.mxu1 %v298_v13 }
  0x22   :  { %268 = vmatmul.mubr.bf16.vlgmr.msra.gmra.mrb[0].mxu0 %v44_v18  ;;  %272 = vmatmul.mubr.bf16.vlgmr.msra.gmra.mrb[0].mxu1 %v46_v19 }
  0xf5   :  { %v269_v21 = vpop.f32.mrb[0].mxu0  ;;  %v273_v22 = vpop.f32.mrb[0].mxu1 }
  0xf6   :  { %v212_v23 = vadd.f32 %v269_v21, %v238_v20  ;;  %v216_v24 = vadd.f32 %v273_v22, %v238_v20  ;;  %v145_v25 = vpop.f32.mrb[1].mxu0  ;;  %v161_v26 = vpop.f32.mrb[1].mxu1 }
  0xf7   :  { %v210_v27 = vadd.f32 %v238_v20, %v145_v25  ;;  %v214_v28 = vadd.f32 %v238_v20, %v161_v26  ;;  %v270_v29 = vpop.f32.mrb[2].mxu0  ;;  %v274_v30 = vpop.f32.mrb[2].mxu1 }
  0xf8   :  { %220 = vst [vmem:[%s397_s3 + $0x10] sm:$0xff] %v212_v23  ;;  %224 = vst [vmem:[%s397_s3 + $0x30] sm:$0xff] %v216_v24  ;;  %v213_v31 = vadd.f32 %v270_v29, %v238_v20  ;;  %v217_v32 = vadd.f32 %v274_v30, %v238_v20  ;;  %v148_v33 = vpop.f32.mrb[3].mxu0  ;;  %v164_v34 = vpop.f32.mrb[3].mxu1 }
  0xf9   :  { %218 = vst [vmem:[%s397_s3] sm:$0xff] %v210_v27  ;;  %222 = vst [vmem:[%s397_s3 + $0x20] sm:$0xff] %v214_v28  ;;  %v211_v35 = vadd.f32 %v238_v20, %v148_v33  ;;  %v215_v36 = vadd.f32 %v238_v20, %v164_v34 }
  0xfa   :  { %221 = vst [vmem:[%s397_s3 + $0x18] sm:$0xff] %v213_v31  ;;  %225 = vst [vmem:[%s397_s3 + $0x38] sm:$0xff] %v217_v32 }
  0xfb   :  { %219 = vst [vmem:[%s397_s3 + $0x8] sm:$0xff] %v211_v35  ;;  %223 = vst [vmem:[%s397_s3 + $0x28] sm:$0xff] %v215_v36 }

// kernel: rnn_forward.5
= control target key start
LH: loop header
LB: loop body
LE: loop exit
PB: predicated region body
PF: predicated region fallthrough
CT: control target
= control target key end

     0   :  { %8 = vsyncpa [#allocation4], 0  ;;  %s638_s12 = smov [#allocation3]   ;;  %s796_s0 = inlined_call_operand.vmem [shape: f32[64,4], index: 0, kind: input, shape index: {}]   ;;  %s797_s1 = inlined_call_operand.vmem [shape: bf16[4,512], index: 1, kind: input, shape index: {}]   ;;  %s798_s2 = inlined_call_operand.hbm [shape: f32[1,512], index: 2, kind: input, shape index: {}]   ;;  %s799_s3 = inlined_call_operand.vmem [shape: bf16[64,512], index: 3, kind: output, shape index: {}]  }
   0x1   :  { %s19_s13 = sshll.u32 %s638_s12, 4  ;;  %s614_s16 = scalar_lea.hbm %s798_s2, 64  ;;  %s20_s13 = int_to_ptr.vmem [resolvable:$true] %s19_s13 }
   0x2   :  { %p615_p0 = scmp.ne.s32.totalorder %s798_s2, %s614_s16  ;;  %p618_p1 = scmp.lt.u32.totalorder %s614_s16, %s798_s2 }
   0x4   :  { %p620_p2 = pnand %p618_p1, %p615_p0 }
   0x6   :  { %623 = shalt.err (!%p620_p2)
}
   0x7   :  { %s624_s21 = scalar_lea.vmem %s20_s13, 64  ;;  %p629_p4 = scmp.lt.s32.totalorder %s20_s13, %s20_s13 }
   0x8   :  { %p625_p3 = scmp.ne.s32.totalorder %s20_s13, %s624_s21  ;;  %p630_p5 = scmp.lt.s32.totalorder %s624_s21, %s624_s21 }
   0xa   :  { %p631_p6 = por %p630_p5, %p629_p4 }
   0xc   :  { %p632_p7 = pnand %p631_p6, %p625_p3 }
   0xe   :  { %635 = shalt.err (!%p632_p7)
}
   0xf   :  { %22 = dma.hbm_to_vmem [thread:$0]  %s798_s2, 64, %s20_s13, [#allocation4]  }
  0x10   :  { %636 = dma.done.wait [#allocation4], 64  }
  0x11   :  { %637 = vsyncadd [#allocation4], 4294967232  ;;  %v113_v0 = vlaneseq  ;;  %v639_v1 = vmov 1983009808   ;;  %v640_v3 = vmov 0   ;;  %v107_v7 = vld [vmem:[%s797_s1] sm:$0xff] }
  0x12   :  { %v111_v2 = vunpack.c.l.s4 %v639_v1  ;;  %184 = vmatprep.mubr.bf16.mxu0 %v640_v3  ;;  %257 = vmatprep.mubr.bf16.mxu1 %v640_v3  ;;  %vm139_vm0 = vcmask 1041408   ;;  %v109_v9 = vcombine.high %v107_v7, %v107_v7  ;;  %v95_v10 = vld [vmem:[%s796_s0] sm:$0xff]  ;;  %v96_v11 = vld [vmem:[%s796_s0 + $0x8] sm:$0xff]  ;;  %vm126_vm1 = vcmask 31744   ;;  %v97_v18 = vld [vmem:[%s796_s0 + $0x10] sm:$0xff] }
  0x13   :  { %v114_v4 = vshrl.u32 %v113_v0, 7  ;;  %v103_v17 = vpack.c.bf16 %v96_v11, %v95_v10  ;;  %v98_v19 = vld [vmem:[%s796_s0 + $0x18] sm:$0xff]  ;;  %v99_v21 = vld [vmem:[%s796_s0 + $0x20] sm:$0xff]  ;;  %v100_v22 = vld [vmem:[%s796_s0 + $0x28] sm:$0xff] }
  0x14   :  { %v112_v5 = vunpack.c.0.s8 %v111_v2  ;;  %v104_v20 = vpack.c.bf16 %v98_v19, %v97_v18  ;;  %v105_v23 = vpack.c.bf16 %v100_v22, %v99_v21  ;;  %v101_v24 = vld [vmem:[%s796_s0 + $0x30] sm:$0xff]  ;;  %v102_v25 = vld [vmem:[%s796_s0 + $0x38] sm:$0xff]  ;;  %v397_v28 = vld [vmem:[#allocation3] sm:$0xf] }
  0x15   :  { %v106_v26 = vpack.c.bf16 %v102_v25, %v101_v24  ;;  %v401_v27 = vsub.s32 0, %v114_v4  ;;  %v405_v29 = vsub.s32 1, %v114_v4  ;;  %v409_v30 = vsub.s32 2, %v114_v4 }
  0x16   :  { %v115_v6 = vsub.s32 %v112_v5, %v114_v4  ;;  %v413_v31 = vsub.s32 3, %v114_v4 }
  0x17   :  { %v708_v32 = vrot.slane %v397_v28, %v401_v27  ;;  %v710_v33 = vrot.slane %v397_v28, %v405_v29  ;;  %v712_v34 = vrot.slane %v397_v28, %v409_v30 }
  0x18   :  { %v116_v8 = vrot.slane %v107_v7, %v115_v6  ;;  %v123_v14 = vrot.slane %v109_v9, %v115_v6  ;;  %v714_v36 = vrot.slane %v397_v28, %v413_v31 }
  0x1a   :  { %v124_v12 = vcombine.high %v116_v8, %v116_v8  ;;  %v141_v13 = vsel %vm139_vm0, %v116_v8, 0  ;;  %v125_v15 = vcombine.high %v123_v14, %v123_v14  ;;  %v147_v16 = vsel %vm139_vm0, %v123_v14, 0 }
  0x1c   :  { %568 = vmatprep.subr.msk.bf16.mxu0 %vm139_vm0, %v124_v12  ;;  %573 = vmatprep.subr.msk.bf16.mxu1 %vm139_vm0, %v125_v15 }
  0x1d   :  { %153 = vmatpush1.bf16.msra.mxu0 %v141_v13  ;;  %226 = vmatpush1.bf16.msra.mxu1 %v147_v16 }
  0x20   :  { %569 = vmatmul.mubr.msk.bf16.vlgmr.msra.gmra.mrb[0].mxu0 %vm126_vm1, %v103_v17  ;;  %574 = vmatmul.mubr.msk.bf16.vlgmr.msra.gmra.mrb[0].mxu1 %vm126_vm1, %v103_v17 }
  0x21   :  { %194 = vmatprep.mubr.bf16.mxu0 %v640_v3  ;;  %267 = vmatprep.mubr.bf16.mxu1 %v640_v3 }
  0x28   :  { %570 = vmatmul.mubr.msk.bf16.gmra.mrb[4].mxu0 %vm126_vm1, %v104_v20  ;;  %575 = vmatmul.mubr.msk.bf16.gmra.mrb[4].mxu1 %vm126_vm1, %v104_v20 }
  0x29   :  { %204 = vmatprep.mubr.bf16.mxu0 %v640_v3  ;;  %277 = vmatprep.mubr.bf16.mxu1 %v640_v3 }
  0x30   :  { %571 = vmatmul.mubr.msk.bf16.gmra.mrb[8].mxu0 %vm126_vm1, %v105_v23  ;;  %576 = vmatmul.mubr.msk.bf16.gmra.mrb[8].mxu1 %vm126_vm1, %v105_v23 }
  0x31   :  { %214 = vmatprep.mubr.bf16.mxu0 %v640_v3  ;;  %287 = vmatprep.mubr.bf16.mxu1 %v640_v3 }
  0x38   :  { %572 = vmatmul.mubr.msk.bf16.gmra.mrb[12].mxu0 %vm126_vm1, %v106_v26  ;;  %577 = vmatmul.mubr.msk.bf16.gmra.mrb[12].mxu1 %vm126_vm1, %v106_v26 }
  0xf3   :  { %v186_v35 = vpop.f32.mrb[0].mxu0  ;;  %v259_v41 = vpop.f32.mrb[0].mxu1 }
  0xf4   :  { %v419_v37 = vadd.f32 %v708_v32, %v186_v35  ;;  %v188_v38 = vpop.f32.mrb[1].mxu0  ;;  %v421_v43 = vadd.f32 %v712_v34, %v259_v41  ;;  %v261_v45 = vpop.f32.mrb[1].mxu1 }
  0xf5   :  { %v420_v39 = vadd.f32 %v710_v33, %v188_v38  ;;  %v190_v40 = vpop.f32.mrb[2].mxu0  ;;  %v422_v48 = vadd.f32 %v714_v36, %v261_v45  ;;  %v263_v49 = vpop.f32.mrb[2].mxu1 }
  0xf6   :  { %v423_v42 = vadd.f32 %v708_v32, %v190_v40  ;;  %v192_v44 = vpop.f32.mrb[3].mxu0  ;;  %v425_v50 = vadd.f32 %v712_v34, %v263_v49  ;;  %v265_v51 = vpop.f32.mrb[3].mxu1 }
  0xf7   :  { %v594_v46 = vpack.c.bf16 %v420_v39, %v419_v37  ;;  %v424_v47 = vadd.f32 %v710_v33, %v192_v44  ;;  %v595_v53 = vpack.c.bf16 %v422_v48, %v421_v43  ;;  %v426_v54 = vadd.f32 %v714_v36, %v265_v51 }
  0xf9   :  { %547 = vst [vmem:[%s799_s3] sm:$0xff] %v594_v46  ;;  %v596_v52 = vpack.c.bf16 %v424_v47, %v423_v42  ;;  %548 = vst [vmem:[%s799_s3 + $0x8] sm:$0xff] %v595_v53  ;;  %v597_v55 = vpack.c.bf16 %v426_v54, %v425_v50 }
  0xfb   :  { %549 = vst [vmem:[%s799_s3 + $0x10] sm:$0xff] %v596_v52  ;;  %v196_v56 = vpop.f32.mrb[4].mxu0  ;;  %550 = vst [vmem:[%s799_s3 + $0x18] sm:$0xff] %v597_v55  ;;  %v269_v61 = vpop.f32.mrb[4].mxu1 }
  0xfc   :  { %v427_v57 = vadd.f32 %v708_v32, %v196_v56  ;;  %v198_v58 = vpop.f32.mrb[5].mxu0  ;;  %v429_v63 = vadd.f32 %v712_v34, %v269_v61  ;;  %v271_v1 = vpop.f32.mrb[5].mxu1 }
  0xfd   :  { %v428_v59 = vadd.f32 %v710_v33, %v198_v58  ;;  %v200_v60 = vpop.f32.mrb[6].mxu0  ;;  %v430_v4 = vadd.f32 %v714_v36, %v271_v1  ;;  %v273_v5 = vpop.f32.mrb[6].mxu1 }
  0xfe   :  { %v431_v62 = vadd.f32 %v708_v32, %v200_v60  ;;  %v202_v0 = vpop.f32.mrb[7].mxu0  ;;  %v433_v6 = vadd.f32 %v712_v34, %v273_v5  ;;  %v275_v7 = vpop.f32.mrb[7].mxu1 }
  0xff   :  { %v598_v2 = vpack.c.bf16 %v428_v59, %v427_v57  ;;  %v432_v3 = vadd.f32 %v710_v33, %v202_v0  ;;  %v599_v9 = vpack.c.bf16 %v430_v4, %v429_v63  ;;  %v434_v10 = vadd.f32 %v714_v36, %v275_v7 }
 0x101   :  { %551 = vst [vmem:[%s799_s3 + $0x20] sm:$0xff] %v598_v2  ;;  %v600_v8 = vpack.c.bf16 %v432_v3, %v431_v62  ;;  %552 = vst [vmem:[%s799_s3 + $0x28] sm:$0xff] %v599_v9  ;;  %v601_v11 = vpack.c.bf16 %v434_v10, %v433_v6 }
 0x103   :  { %553 = vst [vmem:[%s799_s3 + $0x30] sm:$0xff] %v600_v8  ;;  %v206_v12 = vpop.f32.mrb[8].mxu0  ;;  %554 = vst [vmem:[%s799_s3 + $0x38] sm:$0xff] %v601_v11  ;;  %v279_v17 = vpop.f32.mrb[8].mxu1 }
 0x104   :  { %v435_v13 = vadd.f32 %v708_v32, %v206_v12  ;;  %v208_v14 = vpop.f32.mrb[9].mxu0  ;;  %v437_v19 = vadd.f32 %v712_v34, %v279_v17  ;;  %v281_v21 = vpop.f32.mrb[9].mxu1 }
 0x105   :  { %v436_v15 = vadd.f32 %v710_v33, %v208_v14  ;;  %v210_v16 = vpop.f32.mrb[10].mxu0  ;;  %v438_v24 = vadd.f32 %v714_v36, %v281_v21  ;;  %v283_v25 = vpop.f32.mrb[10].mxu1 }
 0x106   :  { %v439_v18 = vadd.f32 %v708_v32, %v210_v16  ;;  %v212_v20 = vpop.f32.mrb[11].mxu0  ;;  %v441_v26 = vadd.f32 %v712_v34, %v283_v25  ;;  %v285_v27 = vpop.f32.mrb[11].mxu1 }
 0x107   :  { %v602_v22 = vpack.c.bf16 %v436_v15, %v435_v13  ;;  %v440_v23 = vadd.f32 %v710_v33, %v212_v20  ;;  %v603_v29 = vpack.c.bf16 %v438_v24, %v437_v19  ;;  %v442_v30 = vadd.f32 %v714_v36, %v285_v27 }
 0x109   :  { %555 = vst [vmem:[%s799_s3 + $0x40] sm:$0xff] %v602_v22  ;;  %v604_v28 = vpack.c.bf16 %v440_v23, %v439_v18  ;;  %556 = vst [vmem:[%s799_s3 + $0x48] sm:$0xff] %v603_v29  ;;  %v605_v31 = vpack.c.bf16 %v442_v30, %v441_v26 }
 0x10b   :  { %557 = vst [vmem:[%s799_s3 + $0x50] sm:$0xff] %v604_v28  ;;  %v216_v35 = vpop.f32.mrb[12].mxu0  ;;  %558 = vst [vmem:[%s799_s3 + $0x58] sm:$0xff] %v605_v31  ;;  %v289_v41 = vpop.f32.mrb[12].mxu1 }
 0x10c   :  { %v443_v37 = vadd.f32 %v708_v32, %v216_v35  ;;  %v218_v38 = vpop.f32.mrb[13].mxu0  ;;  %v445_v43 = vadd.f32 %v712_v34, %v289_v41  ;;  %v291_v45 = vpop.f32.mrb[13].mxu1 }
 0x10d   :  { %v444_v39 = vadd.f32 %v710_v33, %v218_v38  ;;  %v220_v40 = vpop.f32.mrb[14].mxu0  ;;  %v446_v48 = vadd.f32 %v714_v36, %v291_v45  ;;  %v293_v49 = vpop.f32.mrb[14].mxu1 }
 0x10e   :  { %v447_v42 = vadd.f32 %v708_v32, %v220_v40  ;;  %v222_v44 = vpop.f32.mrb[15].mxu0  ;;  %v449_v50 = vadd.f32 %v712_v34, %v293_v49  ;;  %v295_v51 = vpop.f32.mrb[15].mxu1 }
 0x10f   :  { %v606_v46 = vpack.c.bf16 %v444_v39, %v443_v37  ;;  %v448_v47 = vadd.f32 %v710_v33, %v222_v44  ;;  %v607_v53 = vpack.c.bf16 %v446_v48, %v445_v43  ;;  %v450_v32 = vadd.f32 %v714_v36, %v295_v51 }
 0x111   :  { %559 = vst [vmem:[%s799_s3 + $0x60] sm:$0xff] %v606_v46  ;;  %v608_v52 = vpack.c.bf16 %v448_v47, %v447_v42  ;;  %560 = vst [vmem:[%s799_s3 + $0x68] sm:$0xff] %v607_v53  ;;  %v609_v33 = vpack.c.bf16 %v450_v32, %v449_v50 }
 0x113   :  { %561 = vst [vmem:[%s799_s3 + $0x70] sm:$0xff] %v608_v52  ;;  %562 = vst [vmem:[%s799_s3 + $0x78] sm:$0xff] %v609_v33 }
 0x114   :  { %567 = vsyncpa [#allocation4], 1 }

// kernel: rnn_forward.7
= control target key start
LH: loop header
LB: loop body
LE: loop exit
PB: predicated region body
PF: predicated region fallthrough
CT: control target
= control target key end

     0   :  { %v815_v1 = vmov 0   ;;  %v534_v45 = vlaneseq  ;;  %s1055_s1 = inlined_call_operand.vmem [shape: bf16[128,512], index: 1, kind: input, shape index: {}]   ;;  %s1056_s0 = inlined_call_operand.vmem [shape: f32[64,128], index: 0, kind: input, shape index: {}]   ;;  %s1057_s2 = inlined_call_operand.vmem [shape: f32[1,512], index: 2, kind: input, shape index: {}]   ;;  %s1058_s3 = inlined_call_operand.vmem [shape: bf16[64,512], index: 3, kind: output, shape index: {}]  }
   0x1   :  { %v767_v0 = vld [vmem:[%s1055_s1 + $0x4] ss:$16 sps:$4 sm:$0xff]   ;;  %319 = vmatprep.mubr.bf16.mxu0 %v815_v1  ;;  %392 = vmatprep.mubr.bf16.mxu1 %v815_v1  ;;  %v769_v2 = vld [vmem:[%s1055_s1 + $0xc] ss:$16 sps:$4 sm:$0xff]   ;;  %v771_v3 = vld [vmem:[%s1055_s1] ss:$16 sps:$4 sm:$0xff]  }
   0x2   :  { %287 = vmatprep.subr.bf16.mxu0 %v767_v0  ;;  %v772_v4 = vld [vmem:[%s1055_s1 + $0x8] ss:$16 sps:$4 sm:$0xff]   ;;  %360 = vmatprep.subr.bf16.mxu1 %v769_v2  ;;  %v773_v5 = vld [vmem:[%s1055_s1 + $0x24] ss:$16 sps:$4 sm:$0xff]   ;;  %v775_v6 = vld [vmem:[%s1055_s1 + $0x2c] ss:$16 sps:$4 sm:$0xff]  }
   0x3   :  { %288 = vmatpush1.bf16.msra.mxu0 %v771_v3  ;;  %361 = vmatpush1.bf16.msra.mxu1 %v772_v4  ;;  %v777_v7 = vld [vmem:[%s1055_s1 + $0x20] ss:$16 sps:$4 sm:$0xff]   ;;  %v778_v8 = vld [vmem:[%s1055_s1 + $0x28] ss:$16 sps:$4 sm:$0xff]   ;;  %v779_v9 = vld [vmem:[%s1055_s1 + $0x44] ss:$16 sps:$4 sm:$0xff]  }
   0x4   :  { %289 = vmatprep.subr.bf16.mxu0 %v773_v5  ;;  %362 = vmatprep.subr.bf16.mxu1 %v775_v6  ;;  %v781_v10 = vld [vmem:[%s1055_s1 + $0x4c] ss:$16 sps:$4 sm:$0xff]   ;;  %v783_v11 = vld [vmem:[%s1055_s1 + $0x40] ss:$16 sps:$4 sm:$0xff]   ;;  %v784_v12 = vld [vmem:[%s1055_s1 + $0x48] ss:$16 sps:$4 sm:$0xff]  }
   0x5   :  { %v785_v13 = vld [vmem:[%s1055_s1 + $0x64] ss:$16 sps:$4 sm:$0xff]   ;;  %v787_v14 = vld [vmem:[%s1055_s1 + $0x6c] ss:$16 sps:$4 sm:$0xff]   ;;  %v789_v15 = vld [vmem:[%s1055_s1 + $0x60] ss:$16 sps:$4 sm:$0xff]  }
   0x6   :  { %v790_v16 = vld [vmem:[%s1055_s1 + $0x68] ss:$16 sps:$4 sm:$0xff]   ;;  %v791_v17 = vld [vmem:[%s1055_s1 + $0x84] ss:$16 sps:$4 sm:$0xff]   ;;  %v793_v18 = vld [vmem:[%s1055_s1 + $0x8c] ss:$16 sps:$4 sm:$0xff]  }
   0x7   :  { %290 = vmatpush1.bf16.msra.mxu0 %v777_v7  ;;  %363 = vmatpush1.bf16.msra.mxu1 %v778_v8  ;;  %v795_v19 = vld [vmem:[%s1055_s1 + $0x80] ss:$16 sps:$4 sm:$0xff]   ;;  %v796_v20 = vld [vmem:[%s1055_s1 + $0x88] ss:$16 sps:$4 sm:$0xff]   ;;  %v797_v21 = vld [vmem:[%s1055_s1 + $0xa4] ss:$16 sps:$4 sm:$0xff]  }
   0x8   :  { %291 = vmatprep.subr.bf16.mxu0 %v779_v9  ;;  %364 = vmatprep.subr.bf16.mxu1 %v781_v10  ;;  %v799_v22 = vld [vmem:[%s1055_s1 + $0xac] ss:$16 sps:$4 sm:$0xff]   ;;  %v801_v23 = vld [vmem:[%s1055_s1 + $0xa0] ss:$16 sps:$4 sm:$0xff]   ;;  %v802_v24 = vld [vmem:[%s1055_s1 + $0xa8] ss:$16 sps:$4 sm:$0xff]  }
   0x9   :  { %v803_v25 = vld [vmem:[%s1055_s1 + $0xc4] ss:$16 sps:$4 sm:$0xff]   ;;  %v805_v26 = vld [vmem:[%s1055_s1 + $0xcc] ss:$16 sps:$4 sm:$0xff]   ;;  %v807_v27 = vld [vmem:[%s1055_s1 + $0xc0] ss:$16 sps:$4 sm:$0xff]  }
   0xa   :  { %v808_v28 = vld [vmem:[%s1055_s1 + $0xc8] ss:$16 sps:$4 sm:$0xff]   ;;  %v809_v29 = vld [vmem:[%s1055_s1 + $0xe4] ss:$16 sps:$4 sm:$0xff]   ;;  %v811_v30 = vld [vmem:[%s1055_s1 + $0xec] ss:$16 sps:$4 sm:$0xff]  }
   0xb   :  { %292 = vmatpush1.bf16.msra.mxu0 %v783_v11  ;;  %365 = vmatpush1.bf16.msra.mxu1 %v784_v12  ;;  %v813_v31 = vld [vmem:[%s1055_s1 + $0xe0] ss:$16 sps:$4 sm:$0xff]   ;;  %v814_v32 = vld [vmem:[%s1055_s1 + $0xe8] ss:$16 sps:$4 sm:$0xff]   ;;  %v535_v46 = vshrl.u32 %v534_v45, 7 }
   0xc   :  { %293 = vmatprep.subr.bf16.mxu0 %v785_v13  ;;  %366 = vmatprep.subr.bf16.mxu1 %v787_v14  ;;  %v83_v33 = vld [vmem:[%s1056_s0] sm:$0xff]  ;;  %v84_v34 = vld [vmem:[%s1056_s0 + $0x8] sm:$0xff]  ;;  %v85_v36 = vld [vmem:[%s1056_s0 + $0x10] sm:$0xff] }
   0xd   :  { %v91_v35 = vpack.c.bf16 %v84_v34, %v83_v33  ;;  %v86_v37 = vld [vmem:[%s1056_s0 + $0x18] sm:$0xff]  ;;  %v87_v39 = vld [vmem:[%s1056_s0 + $0x20] sm:$0xff]  ;;  %v88_v40 = vld [vmem:[%s1056_s0 + $0x28] sm:$0xff]  ;;  %v536_v47 = vsub.s32 0, %v535_v46  ;;  %v544_v48 = vsub.s32 2, %v535_v46  ;;  %v540_v50 = vsub.s32 1, %v535_v46 }
   0xe   :  { %v92_v38 = vpack.c.bf16 %v86_v37, %v85_v36  ;;  %v93_v41 = vpack.c.bf16 %v88_v40, %v87_v39  ;;  %v89_v42 = vld [vmem:[%s1056_s0 + $0x30] sm:$0xff]  ;;  %v90_v43 = vld [vmem:[%s1056_s0 + $0x38] sm:$0xff]  ;;  %v532_v49 = vld [vmem:[%s1057_s2] sm:$0xf]  ;;  %v548_v51 = vsub.s32 3, %v535_v46 }
   0xf   :  { %294 = vmatpush1.bf16.msra.mxu0 %v789_v15  ;;  %367 = vmatpush1.bf16.msra.mxu1 %v790_v16  ;;  %v94_v44 = vpack.c.bf16 %v90_v43, %v89_v42  ;;  %v967_v52 = vrot.slane %v532_v49, %v536_v47  ;;  %v969_v53 = vrot.slane %v532_v49, %v544_v48 }
  0x10   :  { %295 = vmatprep.subr.bf16.mxu0 %v791_v17  ;;  %368 = vmatprep.subr.bf16.mxu1 %v793_v18  ;;  %v971_v54 = vrot.slane %v532_v49, %v540_v50  ;;  %v973_v55 = vrot.slane %v532_v49, %v548_v51 }
  0x13   :  { %296 = vmatpush1.bf16.msra.mxu0 %v795_v19  ;;  %369 = vmatpush1.bf16.msra.mxu1 %v796_v20 }
  0x14   :  { %297 = vmatprep.subr.bf16.mxu0 %v797_v21  ;;  %370 = vmatprep.subr.bf16.mxu1 %v799_v22 }
  0x17   :  { %298 = vmatpush1.bf16.msra.mxu0 %v801_v23  ;;  %371 = vmatpush1.bf16.msra.mxu1 %v802_v24 }
  0x18   :  { %299 = vmatprep.subr.bf16.mxu0 %v803_v25  ;;  %372 = vmatprep.subr.bf16.mxu1 %v805_v26 }
  0x1b   :  { %300 = vmatpush1.bf16.msra.mxu0 %v807_v27  ;;  %373 = vmatpush1.bf16.msra.mxu1 %v808_v28 }
  0x1c   :  { %301 = vmatprep.subr.bf16.mxu0 %v809_v29  ;;  %374 = vmatprep.subr.bf16.mxu1 %v811_v30 }
  0x1f   :  { %302 = vmatpush1.bf16.msra.mxu0 %v813_v31  ;;  %375 = vmatpush1.bf16.msra.mxu1 %v814_v32 }
  0x22   :  { %320 = vmatmul.mubr.bf16.vlgmr.msra.gmra.mrb[0].mxu0 %v91_v35  ;;  %393 = vmatmul.mubr.bf16.vlgmr.msra.gmra.mrb[0].mxu1 %v91_v35 }
  0x23   :  { %329 = vmatprep.mubr.bf16.mxu0 %v815_v1  ;;  %402 = vmatprep.mubr.bf16.mxu1 %v815_v1 }
  0x2a   :  { %330 = vmatmul.mubr.bf16.gmra.mrb[4].mxu0 %v92_v38  ;;  %403 = vmatmul.mubr.bf16.gmra.mrb[4].mxu1 %v92_v38 }
  0x2b   :  { %339 = vmatprep.mubr.bf16.mxu0 %v815_v1  ;;  %412 = vmatprep.mubr.bf16.mxu1 %v815_v1 }
  0x32   :  { %340 = vmatmul.mubr.bf16.gmra.mrb[8].mxu0 %v93_v41  ;;  %413 = vmatmul.mubr.bf16.gmra.mrb[8].mxu1 %v93_v41 }
  0x33   :  { %349 = vmatprep.mubr.bf16.mxu0 %v815_v1  ;;  %422 = vmatprep.mubr.bf16.mxu1 %v815_v1 }
  0x3a   :  { %350 = vmatmul.mubr.bf16.gmra.mrb[12].mxu0 %v94_v44  ;;  %423 = vmatmul.mubr.bf16.gmra.mrb[12].mxu1 %v94_v44 }
  0xf5   :  { %v321_v56 = vpop.f32.mrb[0].mxu0  ;;  %v394_v57 = vpop.f32.mrb[0].mxu1 }
  0xf6   :  { %v554_v58 = vadd.f32 %v967_v52, %v321_v56  ;;  %v556_v59 = vadd.f32 %v969_v53, %v394_v57  ;;  %v323_v60 = vpop.f32.mrb[1].mxu0  ;;  %v396_v61 = vpop.f32.mrb[1].mxu1 }
  0xf7   :  { %v555_v62 = vadd.f32 %v971_v54, %v323_v60  ;;  %v557_v63 = vadd.f32 %v973_v55, %v396_v61  ;;  %v325_v0 = vpop.f32.mrb[2].mxu0  ;;  %v398_v1 = vpop.f32.mrb[2].mxu1 }
  0xf8   :  { %v558_v2 = vadd.f32 %v967_v52, %v325_v0  ;;  %v560_v3 = vadd.f32 %v969_v53, %v398_v1  ;;  %v327_v4 = vpop.f32.mrb[3].mxu0  ;;  %v400_v5 = vpop.f32.mrb[3].mxu1 }
  0xf9   :  { %v750_v6 = vpack.c.bf16 %v555_v62, %v554_v58  ;;  %v751_v7 = vpack.c.bf16 %v557_v63, %v556_v59  ;;  %v559_v8 = vadd.f32 %v971_v54, %v327_v4  ;;  %v561_v9 = vadd.f32 %v973_v55, %v400_v5 }
  0xfb   :  { %682 = vst [vmem:[%s1058_s3] sm:$0xff] %v750_v6  ;;  %683 = vst [vmem:[%s1058_s3 + $0x8] sm:$0xff] %v751_v7  ;;  %v752_v10 = vpack.c.bf16 %v559_v8, %v558_v2  ;;  %v753_v11 = vpack.c.bf16 %v561_v9, %v560_v3 }
  0xfd   :  { %684 = vst [vmem:[%s1058_s3 + $0x10] sm:$0xff] %v752_v10  ;;  %685 = vst [vmem:[%s1058_s3 + $0x18] sm:$0xff] %v753_v11  ;;  %v331_v12 = vpop.f32.mrb[4].mxu0  ;;  %v404_v13 = vpop.f32.mrb[4].mxu1 }
  0xfe   :  { %v562_v14 = vadd.f32 %v967_v52, %v331_v12  ;;  %v564_v15 = vadd.f32 %v969_v53, %v404_v13  ;;  %v333_v16 = vpop.f32.mrb[5].mxu0  ;;  %v406_v17 = vpop.f32.mrb[5].mxu1 }
  0xff   :  { %v563_v18 = vadd.f32 %v971_v54, %v333_v16  ;;  %v565_v19 = vadd.f32 %v973_v55, %v406_v17  ;;  %v335_v20 = vpop.f32.mrb[6].mxu0  ;;  %v408_v21 = vpop.f32.mrb[6].mxu1 }
 0x100   :  { %v566_v22 = vadd.f32 %v967_v52, %v335_v20  ;;  %v568_v23 = vadd.f32 %v969_v53, %v408_v21  ;;  %v337_v24 = vpop.f32.mrb[7].mxu0  ;;  %v410_v25 = vpop.f32.mrb[7].mxu1 }
 0x101   :  { %v754_v26 = vpack.c.bf16 %v563_v18, %v562_v14  ;;  %v755_v27 = vpack.c.bf16 %v565_v19, %v564_v15  ;;  %v567_v28 = vadd.f32 %v971_v54, %v337_v24  ;;  %v569_v29 = vadd.f32 %v973_v55, %v410_v25 }
 0x103   :  { %686 = vst [vmem:[%s1058_s3 + $0x20] sm:$0xff] %v754_v26  ;;  %687 = vst [vmem:[%s1058_s3 + $0x28] sm:$0xff] %v755_v27  ;;  %v756_v30 = vpack.c.bf16 %v567_v28, %v566_v22  ;;  %v757_v31 = vpack.c.bf16 %v569_v29, %v568_v23 }
 0x105   :  { %688 = vst [vmem:[%s1058_s3 + $0x30] sm:$0xff] %v756_v30  ;;  %689 = vst [vmem:[%s1058_s3 + $0x38] sm:$0xff] %v757_v31  ;;  %v341_v32 = vpop.f32.mrb[8].mxu0  ;;  %v414_v33 = vpop.f32.mrb[8].mxu1 }
 0x106   :  { %v570_v34 = vadd.f32 %v967_v52, %v341_v32  ;;  %v572_v35 = vadd.f32 %v969_v53, %v414_v33  ;;  %v343_v36 = vpop.f32.mrb[9].mxu0  ;;  %v416_v37 = vpop.f32.mrb[9].mxu1 }
 0x107   :  { %v571_v38 = vadd.f32 %v971_v54, %v343_v36  ;;  %v573_v39 = vadd.f32 %v973_v55, %v416_v37  ;;  %v345_v40 = vpop.f32.mrb[10].mxu0  ;;  %v418_v41 = vpop.f32.mrb[10].mxu1 }
 0x108   :  { %v574_v42 = vadd.f32 %v967_v52, %v345_v40  ;;  %v576_v43 = vadd.f32 %v969_v53, %v418_v41  ;;  %v347_v44 = vpop.f32.mrb[11].mxu0  ;;  %v420_v45 = vpop.f32.mrb[11].mxu1 }
 0x109   :  { %v758_v46 = vpack.c.bf16 %v571_v38, %v570_v34  ;;  %v759_v47 = vpack.c.bf16 %v573_v39, %v572_v35  ;;  %v575_v48 = vadd.f32 %v971_v54, %v347_v44  ;;  %v577_v49 = vadd.f32 %v973_v55, %v420_v45 }
 0x10b   :  { %690 = vst [vmem:[%s1058_s3 + $0x40] sm:$0xff] %v758_v46  ;;  %691 = vst [vmem:[%s1058_s3 + $0x48] sm:$0xff] %v759_v47  ;;  %v760_v50 = vpack.c.bf16 %v575_v48, %v574_v42  ;;  %v761_v51 = vpack.c.bf16 %v577_v49, %v576_v43 }
 0x10d   :  { %692 = vst [vmem:[%s1058_s3 + $0x50] sm:$0xff] %v760_v50  ;;  %693 = vst [vmem:[%s1058_s3 + $0x58] sm:$0xff] %v761_v51  ;;  %v351_v56 = vpop.f32.mrb[12].mxu0  ;;  %v424_v57 = vpop.f32.mrb[12].mxu1 }
 0x10e   :  { %v578_v58 = vadd.f32 %v967_v52, %v351_v56  ;;  %v580_v59 = vadd.f32 %v969_v53, %v424_v57  ;;  %v353_v60 = vpop.f32.mrb[13].mxu0  ;;  %v426_v61 = vpop.f32.mrb[13].mxu1 }
 0x10f   :  { %v579_v62 = vadd.f32 %v971_v54, %v353_v60  ;;  %v581_v63 = vadd.f32 %v973_v55, %v426_v61  ;;  %v355_v0 = vpop.f32.mrb[14].mxu0  ;;  %v428_v1 = vpop.f32.mrb[14].mxu1 }
 0x110   :  { %v582_v2 = vadd.f32 %v967_v52, %v355_v0  ;;  %v584_v3 = vadd.f32 %v969_v53, %v428_v1  ;;  %v357_v4 = vpop.f32.mrb[15].mxu0  ;;  %v430_v5 = vpop.f32.mrb[15].mxu1 }
 0x111   :  { %v762_v6 = vpack.c.bf16 %v579_v62, %v578_v58  ;;  %v763_v7 = vpack.c.bf16 %v581_v63, %v580_v59  ;;  %v583_v8 = vadd.f32 %v971_v54, %v357_v4  ;;  %v585_v9 = vadd.f32 %v973_v55, %v430_v5 }
 0x113   :  { %694 = vst [vmem:[%s1058_s3 + $0x60] sm:$0xff] %v762_v6  ;;  %695 = vst [vmem:[%s1058_s3 + $0x68] sm:$0xff] %v763_v7  ;;  %v764_v10 = vpack.c.bf16 %v583_v8, %v582_v2  ;;  %v765_v52 = vpack.c.bf16 %v585_v9, %v584_v3 }
 0x115   :  { %696 = vst [vmem:[%s1058_s3 + $0x70] sm:$0xff] %v764_v10  ;;  %697 = vst [vmem:[%s1058_s3 + $0x78] sm:$0xff] %v765_v52 }

// kernel: rnn_forward.6
= control target key start
LH: loop header
LB: loop body
LE: loop exit
PB: predicated region body
PF: predicated region fallthrough
CT: control target
= control target key end

     0   :  { %v1463_v1 = vmov 0   ;;  %v1464_v33 = vmov 0.0|0.0   ;;  %s2072_s1 = inlined_call_operand.vmem [shape: bf16[128,512], index: 1, kind: input, shape index: {}]   ;;  %s2073_s0 = inlined_call_operand.vmem [shape: bf16[8,8,512], index: 0, kind: input, shape index: {}]   ;;  %s2074_s2 = inlined_call_operand.vmem [shape: f32[8,8,128], index: 2, kind: output, shape index: {}]  }
   0x1   :  { %v1483_v0 = vld [vmem:[%s2072_s1 + $0x4] ss:$16 sps:$4 sm:$0xff]   ;;  %251 = vmatprep.mubr.bf16.mxu0 %v1463_v1  ;;  %292 = vmatprep.mubr.bf16.mxu1 %v1463_v1  ;;  %v1490_v2 = vld [vmem:[%s2072_s1] ss:$16 sps:$4 sm:$0xff]   ;;  %v1513_v6 = vld [vmem:[%s2072_s1 + $0xc] ss:$16 sps:$4 sm:$0xff]  }
   0x2   :  { %219 = vmatprep.subr.bf16.mxu0 %v1483_v0  ;;  %v1496_v3 = vld [vmem:[%s2072_s1 + $0x24] ss:$16 sps:$4 sm:$0xff]   ;;  %v1502_v4 = vld [vmem:[%s2072_s1 + $0x20] ss:$16 sps:$4 sm:$0xff]   ;;  %v1518_v7 = vld [vmem:[%s2072_s1 + $0x8] ss:$16 sps:$4 sm:$0xff]   ;;  %260 = vmatprep.subr.bf16.mxu1 %v1513_v6 }
   0x3   :  { %220 = vmatpush1.bf16.msra.mxu0 %v1490_v2  ;;  %v1508_v5 = vld [vmem:[%s2072_s1 + $0x44] ss:$16 sps:$4 sm:$0xff]   ;;  %v1524_v8 = vld [vmem:[%s2072_s1 + $0x40] ss:$16 sps:$4 sm:$0xff]   ;;  %261 = vmatpush1.bf16.msra.mxu1 %v1518_v7  ;;  %v1537_v10 = vld [vmem:[%s2072_s1 + $0x2c] ss:$16 sps:$4 sm:$0xff]  }
   0x4   :  { %221 = vmatprep.subr.bf16.mxu0 %v1496_v3  ;;  %v1531_v9 = vld [vmem:[%s2072_s1 + $0x64] ss:$16 sps:$4 sm:$0xff]   ;;  %v1542_v11 = vld [vmem:[%s2072_s1 + $0x28] ss:$16 sps:$4 sm:$0xff]   ;;  %262 = vmatprep.subr.bf16.mxu1 %v1537_v10  ;;  %v1549_v12 = vld [vmem:[%s2072_s1 + $0x60] ss:$16 sps:$4 sm:$0xff]  }
   0x5   :  { %v1554_v13 = vld [vmem:[%s2072_s1 + $0x84] ss:$16 sps:$4 sm:$0xff]   ;;  %v1559_v14 = vld [vmem:[%s2072_s1 + $0x4c] ss:$16 sps:$4 sm:$0xff]   ;;  %v1566_v15 = vld [vmem:[%s2072_s1 + $0x48] ss:$16 sps:$4 sm:$0xff]  }
   0x6   :  { %v1572_v16 = vld [vmem:[%s2072_s1 + $0x6c] ss:$16 sps:$4 sm:$0xff]   ;;  %v1578_v17 = vld [vmem:[%s2072_s1 + $0x80] ss:$16 sps:$4 sm:$0xff]   ;;  %v1584_v18 = vld [vmem:[%s2072_s1 + $0xa4] ss:$16 sps:$4 sm:$0xff]  }
   0x7   :  { %222 = vmatpush1.bf16.msra.mxu0 %v1502_v4  ;;  %263 = vmatpush1.bf16.msra.mxu1 %v1542_v11  ;;  %v1590_v19 = vld [vmem:[%s2072_s1 + $0x68] ss:$16 sps:$4 sm:$0xff]   ;;  %v1596_v20 = vld [vmem:[%s2072_s1 + $0x8c] ss:$16 sps:$4 sm:$0xff]   ;;  %v1602_v21 = vld [vmem:[%s2072_s1 + $0xa0] ss:$16 sps:$4 sm:$0xff]  }
   0x8   :  { %223 = vmatprep.subr.bf16.mxu0 %v1508_v5  ;;  %264 = vmatprep.subr.bf16.mxu1 %v1559_v14  ;;  %v1607_v22 = vld [vmem:[%s2072_s1 + $0xc4] ss:$16 sps:$4 sm:$0xff]   ;;  %v1614_v23 = vld [vmem:[%s2072_s1 + $0x88] ss:$16 sps:$4 sm:$0xff]   ;;  %v1620_v24 = vld [vmem:[%s2072_s1 + $0xac] ss:$16 sps:$4 sm:$0xff]  }
   0x9   :  { %v1626_v25 = vld [vmem:[%s2072_s1 + $0xc0] ss:$16 sps:$4 sm:$0xff]   ;;  %v1632_v26 = vld [vmem:[%s2072_s1 + $0xe4] ss:$16 sps:$4 sm:$0xff]   ;;  %v1638_v27 = vld [vmem:[%s2072_s1 + $0xa8] ss:$16 sps:$4 sm:$0xff]  }
   0xa   :  { %v1644_v28 = vld [vmem:[%s2072_s1 + $0xcc] ss:$16 sps:$4 sm:$0xff]   ;;  %v1650_v29 = vld [vmem:[%s2072_s1 + $0xe0] ss:$16 sps:$4 sm:$0xff]   ;;  %v1657_v30 = vld [vmem:[%s2072_s1 + $0xc8] ss:$16 sps:$4 sm:$0xff]  }
   0xb   :  { %224 = vmatpush1.bf16.msra.mxu0 %v1524_v8  ;;  %265 = vmatpush1.bf16.msra.mxu1 %v1566_v15  ;;  %v1663_v31 = vld [vmem:[%s2072_s1 + $0xec] ss:$16 sps:$4 sm:$0xff]   ;;  %v1670_v32 = vld [vmem:[%s2072_s1 + $0xe8] ss:$16 sps:$4 sm:$0xff]   ;;  %v52_v34 = vld [vmem:[%s2073_s0] sm:$0xff] }
   0xc   :  { %225 = vmatprep.subr.bf16.mxu0 %v1531_v9  ;;  %266 = vmatprep.subr.bf16.mxu1 %v1572_v16  ;;  %v54_v35 = vunpack.c.l.bf16 %v52_v34  ;;  %v55_v36 = vunpack.c.h.bf16 %v52_v34  ;;  %v53_v38 = vld [vmem:[%s2073_s0 + $0x8] sm:$0xff] }
   0xd   :  { %v57_v45 = vunpack.c.h.bf16 %v53_v38  ;;  %v56_v51 = vunpack.c.l.bf16 %v53_v38 }
   0xf   :  { %226 = vmatpush1.bf16.msra.mxu0 %v1549_v12  ;;  %267 = vmatpush1.bf16.msra.mxu1 %v1590_v19 }
  0x10   :  { %227 = vmatprep.subr.bf16.mxu0 %v1554_v13  ;;  %268 = vmatprep.subr.bf16.mxu1 %v1596_v20 }
  0x13   :  { %228 = vmatpush1.bf16.msra.mxu0 %v1578_v17  ;;  %269 = vmatpush1.bf16.msra.mxu1 %v1614_v23 }
  0x14   :  { %229 = vmatprep.subr.bf16.mxu0 %v1584_v18  ;;  %270 = vmatprep.subr.bf16.mxu1 %v1620_v24 }
  0x17   :  { %230 = vmatpush1.bf16.msra.mxu0 %v1602_v21  ;;  %271 = vmatpush1.bf16.msra.mxu1 %v1638_v27 }
  0x18   :  { %231 = vmatprep.subr.bf16.mxu0 %v1607_v22  ;;  %272 = vmatprep.subr.bf16.mxu1 %v1644_v28 }
  0x1b   :  { %232 = vmatpush1.bf16.msra.mxu0 %v1626_v25  ;;  %273 = vmatpush1.bf16.msra.mxu1 %v1657_v30 }
  0x1c   :  { %233 = vmatprep.subr.bf16.mxu0 %v1632_v26  ;;  %274 = vmatprep.subr.bf16.mxu1 %v1663_v31 }
  0x1f   :  { %234 = vmatpush1.bf16.msra.mxu0 %v1650_v29  ;;  %275 = vmatpush1.bf16.msra.mxu1 %v1670_v32 }
  0x20   :  { %338 = vmatprep.subr.bf16.mxu0 %v1483_v0  ;;  %379 = vmatprep.subr.bf16.mxu1 %v1513_v6 }
  0x22   :  { %252 = vmatmul.mubr.bf16.vlgmr.msra.gmra.mrb[0].mxu0 %v1464_v33  ;;  %293 = vmatmul.mubr.bf16.vlgmr.msra.gmra.mrb[0].mxu1 %v1464_v33 }
  0x23   :  { %339 = vmatpush1.bf16.msra.mxu0 %v1490_v2  ;;  %370 = vmatprep.mubr.bf16.mxu0 %v1463_v1 }
  0x24   :  { %340 = vmatprep.subr.bf16.mxu0 %v1496_v3  ;;  %380 = vmatpush1.bf16.msra.mxu1 %v1518_v7 }
  0x25   :  { %381 = vmatprep.subr.bf16.mxu1 %v1537_v10  ;;  %411 = vmatprep.mubr.bf16.mxu1 %v1463_v1 }
  0x27   :  { %341 = vmatpush1.bf16.msra.mxu0 %v1502_v4 }
  0x28   :  { %342 = vmatprep.subr.bf16.mxu0 %v1508_v5  ;;  %382 = vmatpush1.bf16.msra.mxu1 %v1542_v11 }
  0x29   :  { %383 = vmatprep.subr.bf16.mxu1 %v1559_v14 }
  0x2b   :  { %343 = vmatpush1.bf16.msra.mxu0 %v1524_v8 }
  0x2c   :  { %344 = vmatprep.subr.bf16.mxu0 %v1531_v9  ;;  %384 = vmatpush1.bf16.msra.mxu1 %v1566_v15 }
  0x2d   :  { %385 = vmatprep.subr.bf16.mxu1 %v1572_v16 }
  0x2f   :  { %345 = vmatpush1.bf16.msra.mxu0 %v1549_v12 }
  0x30   :  { %346 = vmatprep.subr.bf16.mxu0 %v1554_v13  ;;  %386 = vmatpush1.bf16.msra.mxu1 %v1590_v19 }
  0x31   :  { %387 = vmatprep.subr.bf16.mxu1 %v1596_v20 }
  0x33   :  { %347 = vmatpush1.bf16.msra.mxu0 %v1578_v17 }
  0x34   :  { %348 = vmatprep.subr.bf16.mxu0 %v1584_v18  ;;  %388 = vmatpush1.bf16.msra.mxu1 %v1614_v23 }
  0x35   :  { %389 = vmatprep.subr.bf16.mxu1 %v1620_v24 }
  0x37   :  { %349 = vmatpush1.bf16.msra.mxu0 %v1602_v21 }
  0x38   :  { %350 = vmatprep.subr.bf16.mxu0 %v1607_v22  ;;  %390 = vmatpush1.bf16.msra.mxu1 %v1638_v27 }
  0x39   :  { %391 = vmatprep.subr.bf16.mxu1 %v1644_v28 }
  0x3b   :  { %351 = vmatpush1.bf16.msra.mxu0 %v1626_v25 }
  0x3c   :  { %352 = vmatprep.subr.bf16.mxu0 %v1632_v26  ;;  %392 = vmatpush1.bf16.msra.mxu1 %v1657_v30 }
  0x3d   :  { %393 = vmatprep.subr.bf16.mxu1 %v1663_v31 }
  0x3f   :  { %353 = vmatpush1.bf16.msra.mxu0 %v1650_v29 }
  0x40   :  { %458 = vmatprep.subr.bf16.mxu0 %v1483_v0  ;;  %394 = vmatpush1.bf16.msra.mxu1 %v1670_v32 }
  0x41   :  { %499 = vmatprep.subr.bf16.mxu1 %v1513_v6 }
  0xf5   :  { %v253_v37 = vpop.f32.mrb[0].mxu0  ;;  %v294_v47 = vpop.f32.mrb[0].mxu1 }
  0xf6   :  { %v301_v39 = vadd.f32 %v253_v37, %v54_v35  ;;  %v255_v40 = vpop.f32.mrb[1].mxu0  ;;  %v296_v48 = vpop.f32.mrb[1].mxu1  ;;  %v303_v54 = vadd.f32 %v294_v47, %v56_v51 }
  0xf7   :  { %v302_v41 = vadd.f32 %v255_v40, %v55_v36  ;;  %v257_v42 = vpop.f32.mrb[2].mxu0  ;;  %v304_v49 = vadd.f32 %v296_v48, %v57_v45  ;;  %v298_v50 = vpop.f32.mrb[2].mxu1  ;;  %v1211_v40 = vld [vmem:[%s2073_s0 + $0x10] sm:$0xff] }
  0xf8   :  { %v1208_v43 = vmul.f32 -1.442695, %v301_v39  ;;  %v258_v44 = vpop.f32.mrb[3].mxu0  ;;  %v299_v52 = vpop.f32.mrb[3].mxu1  ;;  %v334_v42 = vunpack.c.h.bf16 %v1211_v40 }
  0xf9   :  { %v1209_v46 = vmul.f32 -1.442695, %v302_v41  ;;  %v1210_v53 = vmul.f32 -1.442695, %v304_v49  ;;  %v333_v41 = vunpack.c.l.bf16 %v1211_v40 }
  0xfa   :  { %1303 = vpow2.f32 %v1208_v43 }
  0xfb   :  { %1305 = vpow2.f32 %v1209_v46  ;;  %v1212_v46 = vld [vmem:[%s2073_s0 + $0x18] sm:$0xff] }
  0xfc   :  { %1307 = vpow2.f32 %v1210_v53 }
  0xfd   :  { %1309 = vtanh.f32 %v303_v54 }
 0x104   :  { %v1304_v55 = vpop.eup %1303 }
 0x105   :  { %v1306_v56 = vpop.eup %1305  ;;  %v308_v57 = vadd.f32 1.0, %v1304_v55 }
 0x106   :  { %v314_v58 = vadd.f32 1.0, %v1306_v56  ;;  %v1308_v59 = vpop.eup %1307  ;;  %v336_v56 = vunpack.c.h.bf16 %v1212_v46 }
 0x107   :  { %1311 = vrcp.f32 %v308_v57  ;;  %v1310_v60 = vpop.eup %1309  ;;  %v321_v62 = vadd.f32 1.0, %v1308_v59 }
 0x108   :  { %1313 = vrcp.f32 %v314_v58  ;;  %v335_v58 = vunpack.c.l.bf16 %v1212_v46 }
 0x109   :  { %1315 = vrcp.f32 %v321_v62 }
 0x111   :  { %v1312_v61 = vpop.eup %1311 }
 0x112   :  { %v1314_v63 = vpop.eup %1313  ;;  %v325_v33 = vmul.f32 %v1312_v61, %v1310_v60 }
 0x113   :  { %v324_v34 = vmul.f32 0.0, %v1314_v63  ;;  %v1316_v36 = vpop.eup %1315 }
 0x115   :  { %v1716_v35 = vadd.f32 %v325_v33, %v324_v34 }
 0x117   :  { %1317 = vtanh.f32 %v1716_v35 }
 0x121   :  { %v1318_v37 = vpop.eup %1317 }
 0x122   :  { %v328_v38 = vmul.f32 %v1318_v37, %v1316_v36 }
 0x124   :  { %329 = vst [vmem:[%s2074_s2] sm:$0xff] %v328_v38  ;;  %v337_v39 = vpack.c.bf16 %v328_v38, %v328_v38 }
 0x126   :  { %371 = vmatmul.mubr.bf16.vlgmr.msra.gmra.mrb[4].mxu0 %v337_v39  ;;  %412 = vmatmul.mubr.bf16.vlgmr.msra.gmra.mrb[4].mxu1 %v337_v39 }
 0x127   :  { %459 = vmatpush1.bf16.msra.mxu0 %v1490_v2  ;;  %500 = vmatpush1.bf16.msra.mxu1 %v1518_v7 }
 0x128   :  { %460 = vmatprep.subr.bf16.mxu0 %v1496_v3  ;;  %501 = vmatprep.subr.bf16.mxu1 %v1537_v10 }
 0x129   :  { %490 = vmatprep.mubr.bf16.mxu0 %v1463_v1  ;;  %531 = vmatprep.mubr.bf16.mxu1 %v1463_v1 }
 0x12b   :  { %461 = vmatpush1.bf16.msra.mxu0 %v1502_v4  ;;  %502 = vmatpush1.bf16.msra.mxu1 %v1542_v11 }
 0x12c   :  { %462 = vmatprep.subr.bf16.mxu0 %v1508_v5  ;;  %503 = vmatprep.subr.bf16.mxu1 %v1559_v14 }
 0x12f   :  { %463 = vmatpush1.bf16.msra.mxu0 %v1524_v8  ;;  %504 = vmatpush1.bf16.msra.mxu1 %v1566_v15 }
 0x130   :  { %464 = vmatprep.subr.bf16.mxu0 %v1531_v9  ;;  %505 = vmatprep.subr.bf16.mxu1 %v1572_v16 }
 0x133   :  { %465 = vmatpush1.bf16.msra.mxu0 %v1549_v12  ;;  %506 = vmatpush1.bf16.msra.mxu1 %v1590_v19 }
 0x134   :  { %466 = vmatprep.subr.bf16.mxu0 %v1554_v13  ;;  %507 = vmatprep.subr.bf16.mxu1 %v1596_v20 }
 0x137   :  { %467 = vmatpush1.bf16.msra.mxu0 %v1578_v17  ;;  %508 = vmatpush1.bf16.msra.mxu1 %v1614_v23 }
 0x138   :  { %468 = vmatprep.subr.bf16.mxu0 %v1584_v18  ;;  %509 = vmatprep.subr.bf16.mxu1 %v1620_v24 }
 0x13b   :  { %469 = vmatpush1.bf16.msra.mxu0 %v1602_v21  ;;  %510 = vmatpush1.bf16.msra.mxu1 %v1638_v27 }
 0x13c   :  { %470 = vmatprep.subr.bf16.mxu0 %v1607_v22  ;;  %511 = vmatprep.subr.bf16.mxu1 %v1644_v28 }
 0x13f   :  { %471 = vmatpush1.bf16.msra.mxu0 %v1626_v25  ;;  %512 = vmatpush1.bf16.msra.mxu1 %v1657_v30 }
 0x140   :  { %472 = vmatprep.subr.bf16.mxu0 %v1632_v26  ;;  %513 = vmatprep.subr.bf16.mxu1 %v1663_v31 }
 0x143   :  { %473 = vmatpush1.bf16.msra.mxu0 %v1650_v29  ;;  %514 = vmatpush1.bf16.msra.mxu1 %v1670_v32 }
 0x144   :  { %578 = vmatprep.subr.bf16.mxu0 %v1483_v0  ;;  %619 = vmatprep.subr.bf16.mxu1 %v1513_v6 }
 0x1f9   :  { %v372_v43 = vpop.f32.mrb[4].mxu0  ;;  %v413_v44 = vpop.f32.mrb[4].mxu1 }
 0x1fa   :  { %v420_v45 = vadd.f32 %v372_v43, %v333_v41  ;;  %v374_v47 = vpop.f32.mrb[5].mxu0  ;;  %v415_v48 = vpop.f32.mrb[5].mxu1  ;;  %v422_v60 = vadd.f32 %v413_v44, %v335_v58 }
 0x1fb   :  { %v421_v49 = vadd.f32 %v374_v47, %v334_v42  ;;  %v376_v50 = vpop.f32.mrb[6].mxu0  ;;  %v417_v51 = vpop.f32.mrb[6].mxu1  ;;  %v423_v57 = vadd.f32 %v415_v48, %v336_v56 }
 0x1fc   :  { %v1213_v52 = vmul.f32 -1.442695, %v420_v45  ;;  %v377_v53 = vpop.f32.mrb[7].mxu0  ;;  %v418_v54 = vpop.f32.mrb[7].mxu1 }
 0x1fd   :  { %v1214_v55 = vmul.f32 -1.442695, %v421_v49  ;;  %v1215_v59 = vmul.f32 -1.442695, %v423_v57 }
 0x1fe   :  { %1319 = vpow2.f32 %v1213_v52  ;;  %v1218_v52 = vld [vmem:[%s2073_s0 + $0x28] sm:$0xff] }
 0x1ff   :  { %1321 = vpow2.f32 %v1214_v55 }
 0x200   :  { %1323 = vpow2.f32 %v1215_v59 }
 0x201   :  { %1325 = vtanh.f32 %v422_v60 }
 0x208   :  { %v1320_v61 = vpop.eup %1319 }
 0x209   :  { %v1322_v62 = vpop.eup %1321  ;;  %v427_v63 = vadd.f32 1.0, %v1320_v61 }
 0x20a   :  { %v433_v33 = vadd.f32 1.0, %v1322_v62  ;;  %v1324_v34 = vpop.eup %1323  ;;  %v456_v62 = vunpack.c.h.bf16 %v1218_v52 }
 0x20b   :  { %1327 = vrcp.f32 %v427_v63  ;;  %v1326_v36 = vpop.eup %1325  ;;  %v440_v40 = vadd.f32 1.0, %v1324_v34 }
 0x20c   :  { %1329 = vrcp.f32 %v433_v33  ;;  %v455_v33 = vunpack.c.l.bf16 %v1218_v52 }
 0x20d   :  { %1331 = vrcp.f32 %v440_v40 }
 0x215   :  { %v1328_v37 = vpop.eup %1327 }
 0x216   :  { %v1330_v38 = vpop.eup %1329  ;;  %v444_v39 = vmul.f32 %v1328_v37, %v1326_v36 }
 0x217   :  { %v443_v41 = vmul.f32 %v1330_v38, %v1716_v35  ;;  %v1332_v43 = vpop.eup %1331  ;;  %v1217_v35 = vld [vmem:[%s2073_s0 + $0x20] sm:$0xff] }
 0x218   :  { %v453_v47 = vunpack.c.l.bf16 %v1217_v35  ;;  %v454_v48 = vunpack.c.h.bf16 %v1217_v35 }
 0x219   :  { %v1763_v42 = vadd.f32 %v444_v39, %v443_v41 }
 0x21b   :  { %1333 = vtanh.f32 %v1763_v42 }
 0x225   :  { %v1334_v44 = vpop.eup %1333 }
 0x226   :  { %v447_v45 = vmul.f32 %v1334_v44, %v1332_v43 }
 0x228   :  { %1216 = vst [vmem:[%s2074_s2 + $0x8] sm:$0xff] %v447_v45  ;;  %v457_v46 = vpack.c.bf16 %v447_v45, %v447_v45 }
 0x22a   :  { %491 = vmatmul.mubr.bf16.vlgmr.msra.gmra.mrb[8].mxu0 %v457_v46  ;;  %532 = vmatmul.mubr.bf16.vlgmr.msra.gmra.mrb[8].mxu1 %v457_v46 }
 0x22b   :  { %579 = vmatpush1.bf16.msra.mxu0 %v1490_v2  ;;  %620 = vmatpush1.bf16.msra.mxu1 %v1518_v7 }
 0x22c   :  { %580 = vmatprep.subr.bf16.mxu0 %v1496_v3  ;;  %621 = vmatprep.subr.bf16.mxu1 %v1537_v10 }
 0x22d   :  { %610 = vmatprep.mubr.bf16.mxu0 %v1463_v1  ;;  %651 = vmatprep.mubr.bf16.mxu1 %v1463_v1 }
 0x22f   :  { %581 = vmatpush1.bf16.msra.mxu0 %v1502_v4  ;;  %622 = vmatpush1.bf16.msra.mxu1 %v1542_v11 }
 0x230   :  { %582 = vmatprep.subr.bf16.mxu0 %v1508_v5  ;;  %623 = vmatprep.subr.bf16.mxu1 %v1559_v14 }
 0x233   :  { %583 = vmatpush1.bf16.msra.mxu0 %v1524_v8  ;;  %624 = vmatpush1.bf16.msra.mxu1 %v1566_v15 }
 0x234   :  { %584 = vmatprep.subr.bf16.mxu0 %v1531_v9  ;;  %625 = vmatprep.subr.bf16.mxu1 %v1572_v16 }
 0x237   :  { %585 = vmatpush1.bf16.msra.mxu0 %v1549_v12  ;;  %626 = vmatpush1.bf16.msra.mxu1 %v1590_v19 }
 0x238   :  { %586 = vmatprep.subr.bf16.mxu0 %v1554_v13  ;;  %627 = vmatprep.subr.bf16.mxu1 %v1596_v20 }
 0x23b   :  { %587 = vmatpush1.bf16.msra.mxu0 %v1578_v17  ;;  %628 = vmatpush1.bf16.msra.mxu1 %v1614_v23 }
 0x23c   :  { %588 = vmatprep.subr.bf16.mxu0 %v1584_v18  ;;  %629 = vmatprep.subr.bf16.mxu1 %v1620_v24 }
 0x23f   :  { %589 = vmatpush1.bf16.msra.mxu0 %v1602_v21  ;;  %630 = vmatpush1.bf16.msra.mxu1 %v1638_v27 }
 0x240   :  { %590 = vmatprep.subr.bf16.mxu0 %v1607_v22  ;;  %631 = vmatprep.subr.bf16.mxu1 %v1644_v28 }
 0x243   :  { %591 = vmatpush1.bf16.msra.mxu0 %v1626_v25  ;;  %632 = vmatpush1.bf16.msra.mxu1 %v1657_v30 }
 0x244   :  { %592 = vmatprep.subr.bf16.mxu0 %v1632_v26  ;;  %633 = vmatprep.subr.bf16.mxu1 %v1663_v31 }
 0x247   :  { %593 = vmatpush1.bf16.msra.mxu0 %v1650_v29  ;;  %634 = vmatpush1.bf16.msra.mxu1 %v1670_v32 }
 0x248   :  { %698 = vmatprep.subr.bf16.mxu0 %v1483_v0  ;;  %739 = vmatprep.subr.bf16.mxu1 %v1513_v6 }
 0x2fd   :  { %v492_v49 = vpop.f32.mrb[8].mxu0  ;;  %v533_v50 = vpop.f32.mrb[8].mxu1 }
 0x2fe   :  { %v540_v51 = vadd.f32 %v492_v49, %v453_v47  ;;  %v494_v53 = vpop.f32.mrb[9].mxu0  ;;  %v535_v54 = vpop.f32.mrb[9].mxu1  ;;  %v542_v36 = vadd.f32 %v533_v50, %v455_v33 }
 0x2ff   :  { %v541_v55 = vadd.f32 %v494_v53, %v454_v48  ;;  %v496_v56 = vpop.f32.mrb[10].mxu0  ;;  %v537_v57 = vpop.f32.mrb[10].mxu1  ;;  %v543_v63 = vadd.f32 %v535_v54, %v456_v62 }
 0x300   :  { %v1219_v58 = vmul.f32 -1.442695, %v540_v51  ;;  %v497_v59 = vpop.f32.mrb[11].mxu0  ;;  %v538_v60 = vpop.f32.mrb[11].mxu1 }
 0x301   :  { %v1220_v61 = vmul.f32 -1.442695, %v541_v55  ;;  %v1221_v34 = vmul.f32 -1.442695, %v543_v63 }
 0x302   :  { %1335 = vpow2.f32 %v1219_v58  ;;  %v1224_v58 = vld [vmem:[%s2073_s0 + $0x38] sm:$0xff] }
 0x303   :  { %1337 = vpow2.f32 %v1220_v61 }
 0x304   :  { %1339 = vpow2.f32 %v1221_v34 }
 0x305   :  { %1341 = vtanh.f32 %v542_v36 }
 0x30c   :  { %v1336_v37 = vpop.eup %1335 }
 0x30d   :  { %v1338_v38 = vpop.eup %1337  ;;  %v547_v39 = vadd.f32 1.0, %v1336_v37 }
 0x30e   :  { %v553_v40 = vadd.f32 1.0, %v1338_v38  ;;  %v1340_v41 = vpop.eup %1339  ;;  %v576_v38 = vunpack.c.h.bf16 %v1224_v58 }
 0x30f   :  { %1343 = vrcp.f32 %v547_v39  ;;  %v1342_v43 = vpop.eup %1341  ;;  %v560_v35 = vadd.f32 1.0, %v1340_v41 }
 0x310   :  { %1345 = vrcp.f32 %v553_v40  ;;  %v575_v40 = vunpack.c.l.bf16 %v1224_v58 }
 0x311   :  { %1347 = vrcp.f32 %v560_v35 }
 0x319   :  { %v1344_v44 = vpop.eup %1343 }
 0x31a   :  { %v1346_v45 = vpop.eup %1345  ;;  %v564_v46 = vmul.f32 %v1344_v44, %v1342_v43 }
 0x31b   :  { %v563_v47 = vmul.f32 %v1346_v45, %v1763_v42  ;;  %v1348_v49 = vpop.eup %1347  ;;  %v1223_v42 = vld [vmem:[%s2073_s0 + $0x30] sm:$0xff] }
 0x31c   :  { %v573_v53 = vunpack.c.l.bf16 %v1223_v42  ;;  %v574_v54 = vunpack.c.h.bf16 %v1223_v42 }
 0x31d   :  { %v1810_v48 = vadd.f32 %v564_v46, %v563_v47 }
 0x31f   :  { %1349 = vtanh.f32 %v1810_v48 }
 0x329   :  { %v1350_v50 = vpop.eup %1349 }
 0x32a   :  { %v567_v51 = vmul.f32 %v1350_v50, %v1348_v49 }
 0x32c   :  { %1222 = vst [vmem:[%s2074_s2 + $0x10] sm:$0xff] %v567_v51  ;;  %v577_v52 = vpack.c.bf16 %v567_v51, %v567_v51 }
 0x32e   :  { %611 = vmatmul.mubr.bf16.vlgmr.msra.gmra.mrb[12].mxu0 %v577_v52  ;;  %652 = vmatmul.mubr.bf16.vlgmr.msra.gmra.mrb[12].mxu1 %v577_v52 }
 0x32f   :  { %699 = vmatpush1.bf16.msra.mxu0 %v1490_v2  ;;  %740 = vmatpush1.bf16.msra.mxu1 %v1518_v7 }
 0x330   :  { %700 = vmatprep.subr.bf16.mxu0 %v1496_v3  ;;  %741 = vmatprep.subr.bf16.mxu1 %v1537_v10 }
 0x331   :  { %730 = vmatprep.mubr.bf16.mxu0 %v1463_v1  ;;  %771 = vmatprep.mubr.bf16.mxu1 %v1463_v1 }
 0x333   :  { %701 = vmatpush1.bf16.msra.mxu0 %v1502_v4  ;;  %742 = vmatpush1.bf16.msra.mxu1 %v1542_v11 }
 0x334   :  { %702 = vmatprep.subr.bf16.mxu0 %v1508_v5  ;;  %743 = vmatprep.subr.bf16.mxu1 %v1559_v14 }
 0x337   :  { %703 = vmatpush1.bf16.msra.mxu0 %v1524_v8  ;;  %744 = vmatpush1.bf16.msra.mxu1 %v1566_v15 }
 0x338   :  { %704 = vmatprep.subr.bf16.mxu0 %v1531_v9  ;;  %745 = vmatprep.subr.bf16.mxu1 %v1572_v16 }
 0x33b   :  { %705 = vmatpush1.bf16.msra.mxu0 %v1549_v12  ;;  %746 = vmatpush1.bf16.msra.mxu1 %v1590_v19 }
 0x33c   :  { %706 = vmatprep.subr.bf16.mxu0 %v1554_v13  ;;  %747 = vmatprep.subr.bf16.mxu1 %v1596_v20 }
 0x33f   :  { %707 = vmatpush1.bf16.msra.mxu0 %v1578_v17  ;;  %748 = vmatpush1.bf16.msra.mxu1 %v1614_v23 }
 0x340   :  { %708 = vmatprep.subr.bf16.mxu0 %v1584_v18  ;;  %749 = vmatprep.subr.bf16.mxu1 %v1620_v24 }
 0x343   :  { %709 = vmatpush1.bf16.msra.mxu0 %v1602_v21  ;;  %750 = vmatpush1.bf16.msra.mxu1 %v1638_v27 }
 0x344   :  { %710 = vmatprep.subr.bf16.mxu0 %v1607_v22  ;;  %751 = vmatprep.subr.bf16.mxu1 %v1644_v28 }
 0x347   :  { %711 = vmatpush1.bf16.msra.mxu0 %v1626_v25  ;;  %752 = vmatpush1.bf16.msra.mxu1 %v1657_v30 }
 0x348   :  { %712 = vmatprep.subr.bf16.mxu0 %v1632_v26  ;;  %753 = vmatprep.subr.bf16.mxu1 %v1663_v31 }
 0x34b   :  { %713 = vmatpush1.bf16.msra.mxu0 %v1650_v29  ;;  %754 = vmatpush1.bf16.msra.mxu1 %v1670_v32 }
 0x34c   :  { %818 = vmatprep.subr.bf16.mxu0 %v1483_v0  ;;  %859 = vmatprep.subr.bf16.mxu1 %v1513_v6 }
 0x401   :  { %v612_v55 = vpop.f32.mrb[12].mxu0  ;;  %v653_v56 = vpop.f32.mrb[12].mxu1 }
 0x402   :  { %v660_v57 = vadd.f32 %v612_v55, %v573_v53  ;;  %v614_v59 = vpop.f32.mrb[13].mxu0  ;;  %v655_v60 = vpop.f32.mrb[13].mxu1  ;;  %v662_v43 = vadd.f32 %v653_v56, %v575_v40 }
 0x403   :  { %v661_v61 = vadd.f32 %v614_v59, %v574_v54  ;;  %v616_v62 = vpop.f32.mrb[14].mxu0  ;;  %v657_v63 = vpop.f32.mrb[14].mxu1  ;;  %v663_v39 = vadd.f32 %v655_v60, %v576_v38 }
 0x404   :  { %v1225_v33 = vmul.f32 -1.442695, %v660_v57  ;;  %v617_v34 = vpop.f32.mrb[15].mxu0  ;;  %v658_v36 = vpop.f32.mrb[15].mxu1 }
 0x405   :  { %v1226_v37 = vmul.f32 -1.442695, %v661_v61  ;;  %v1227_v41 = vmul.f32 -1.442695, %v663_v39 }
 0x406   :  { %1351 = vpow2.f32 %v1225_v33  ;;  %v1230_v33 = vld [vmem:[%s2073_s0 + $0x48] sm:$0xff] }
 0x407   :  { %1353 = vpow2.f32 %v1226_v37 }
 0x408   :  { %1355 = vpow2.f32 %v1227_v41 }
 0x409   :  { %1357 = vtanh.f32 %v662_v43  ;;  %v696_v43 = vunpack.c.h.bf16 %v1230_v33 }
 0x410   :  { %v1352_v44 = vpop.eup %1351 }
 0x411   :  { %v1354_v45 = vpop.eup %1353  ;;  %v667_v46 = vadd.f32 1.0, %v1352_v44 }
 0x412   :  { %v673_v35 = vadd.f32 1.0, %v1354_v45  ;;  %v1356_v47 = vpop.eup %1355  ;;  %v695_v45 = vunpack.c.l.bf16 %v1230_v33 }
 0x413   :  { %1359 = vrcp.f32 %v667_v46  ;;  %v1358_v49 = vpop.eup %1357  ;;  %v680_v42 = vadd.f32 1.0, %v1356_v47 }
 0x414   :  { %1361 = vrcp.f32 %v673_v35 }
 0x415   :  { %1363 = vrcp.f32 %v680_v42 }
 0x41d   :  { %v1360_v50 = vpop.eup %1359 }
 0x41e   :  { %v1362_v51 = vpop.eup %1361  ;;  %v684_v52 = vmul.f32 %v1360_v50, %v1358_v49 }
 0x41f   :  { %v683_v53 = vmul.f32 %v1362_v51, %v1810_v48  ;;  %v1364_v55 = vpop.eup %1363  ;;  %v1229_v48 = vld [vmem:[%s2073_s0 + $0x40] sm:$0xff] }
 0x420   :  { %v693_v59 = vunpack.c.l.bf16 %v1229_v48  ;;  %v694_v60 = vunpack.c.h.bf16 %v1229_v48 }
 0x421   :  { %v1857_v54 = vadd.f32 %v684_v52, %v683_v53 }
 0x423   :  { %1365 = vtanh.f32 %v1857_v54 }
 0x42d   :  { %v1366_v56 = vpop.eup %1365 }
 0x42e   :  { %v687_v57 = vmul.f32 %v1366_v56, %v1364_v55 }
 0x430   :  { %1228 = vst [vmem:[%s2074_s2 + $0x18] sm:$0xff] %v687_v57  ;;  %v697_v58 = vpack.c.bf16 %v687_v57, %v687_v57 }
 0x432   :  { %731 = vmatmul.mubr.bf16.vlgmr.msra.gmra.mrb[16].mxu0 %v697_v58  ;;  %772 = vmatmul.mubr.bf16.vlgmr.msra.gmra.mrb[16].mxu1 %v697_v58 }
 0x433   :  { %819 = vmatpush1.bf16.msra.mxu0 %v1490_v2  ;;  %860 = vmatpush1.bf16.msra.mxu1 %v1518_v7 }
 0x434   :  { %820 = vmatprep.subr.bf16.mxu0 %v1496_v3  ;;  %861 = vmatprep.subr.bf16.mxu1 %v1537_v10 }
 0x435   :  { %850 = vmatprep.mubr.bf16.mxu0 %v1463_v1  ;;  %891 = vmatprep.mubr.bf16.mxu1 %v1463_v1 }
 0x437   :  { %821 = vmatpush1.bf16.msra.mxu0 %v1502_v4  ;;  %862 = vmatpush1.bf16.msra.mxu1 %v1542_v11 }
 0x438   :  { %822 = vmatprep.subr.bf16.mxu0 %v1508_v5  ;;  %863 = vmatprep.subr.bf16.mxu1 %v1559_v14 }
 0x43b   :  { %823 = vmatpush1.bf16.msra.mxu0 %v1524_v8  ;;  %864 = vmatpush1.bf16.msra.mxu1 %v1566_v15 }
 0x43c   :  { %824 = vmatprep.subr.bf16.mxu0 %v1531_v9  ;;  %865 = vmatprep.subr.bf16.mxu1 %v1572_v16 }
 0x43f   :  { %825 = vmatpush1.bf16.msra.mxu0 %v1549_v12  ;;  %866 = vmatpush1.bf16.msra.mxu1 %v1590_v19 }
 0x440   :  { %826 = vmatprep.subr.bf16.mxu0 %v1554_v13  ;;  %867 = vmatprep.subr.bf16.mxu1 %v1596_v20 }
 0x443   :  { %827 = vmatpush1.bf16.msra.mxu0 %v1578_v17  ;;  %868 = vmatpush1.bf16.msra.mxu1 %v1614_v23 }
 0x444   :  { %828 = vmatprep.subr.bf16.mxu0 %v1584_v18  ;;  %869 = vmatprep.subr.bf16.mxu1 %v1620_v24 }
 0x447   :  { %829 = vmatpush1.bf16.msra.mxu0 %v1602_v21  ;;  %870 = vmatpush1.bf16.msra.mxu1 %v1638_v27 }
 0x448   :  { %830 = vmatprep.subr.bf16.mxu0 %v1607_v22  ;;  %871 = vmatprep.subr.bf16.mxu1 %v1644_v28 }
 0x44b   :  { %831 = vmatpush1.bf16.msra.mxu0 %v1626_v25  ;;  %872 = vmatpush1.bf16.msra.mxu1 %v1657_v30 }
 0x44c   :  { %832 = vmatprep.subr.bf16.mxu0 %v1632_v26  ;;  %873 = vmatprep.subr.bf16.mxu1 %v1663_v31 }
 0x44f   :  { %833 = vmatpush1.bf16.msra.mxu0 %v1650_v29  ;;  %874 = vmatpush1.bf16.msra.mxu1 %v1670_v32 }
 0x450   :  { %938 = vmatprep.subr.bf16.mxu0 %v1483_v0  ;;  %979 = vmatprep.subr.bf16.mxu1 %v1513_v6 }
 0x505   :  { %v732_v61 = vpop.f32.mrb[16].mxu0  ;;  %v773_v62 = vpop.f32.mrb[16].mxu1 }
 0x506   :  { %v780_v63 = vadd.f32 %v732_v61, %v693_v59  ;;  %v734_v34 = vpop.f32.mrb[17].mxu0  ;;  %v775_v36 = vpop.f32.mrb[17].mxu1  ;;  %v782_v35 = vadd.f32 %v773_v62, %v695_v45  ;;  %v1438_v45 = vld [vmem:[%s2072_s1 + $0x28] ss:$16 sps:$4 sm:$0xff]  }
 0x507   :  { %v781_v37 = vadd.f32 %v734_v34, %v694_v60  ;;  %v736_v38 = vpop.f32.mrb[18].mxu0  ;;  %v777_v0 = vpop.f32.mrb[18].mxu1  ;;  %v783_v44 = vadd.f32 %v775_v36, %v696_v43  ;;  %v1436_v43 = vld [vmem:[%s2072_s1 + $0x2c] ss:$16 sps:$4 sm:$0xff]  }
 0x508   :  { %v1231_v39 = vmul.f32 -1.442695, %v780_v63  ;;  %v737_v6 = vpop.f32.mrb[19].mxu0  ;;  %v778_v40 = vpop.f32.mrb[19].mxu1 }
 0x509   :  { %v1232_v41 = vmul.f32 -1.442695, %v781_v37  ;;  %v1233_v46 = vmul.f32 -1.442695, %v783_v44  ;;  %v1433_v6 = vld [vmem:[%s2072_s1] ss:$16 sps:$4 sm:$0xff]  }
 0x50a   :  { %1367 = vpow2.f32 %v1231_v39  ;;  %v1434_v40 = vld [vmem:[%s2072_s1 + $0x8] ss:$16 sps:$4 sm:$0xff]   ;;  %v1437_v44 = vld [vmem:[%s2072_s1 + $0x20] ss:$16 sps:$4 sm:$0xff]  }
 0x50b   :  { %1369 = vpow2.f32 %v1232_v41  ;;  %v1435_v41 = vld [vmem:[%s2072_s1 + $0x24] ss:$16 sps:$4 sm:$0xff]  }
 0x50c   :  { %1371 = vpow2.f32 %v1233_v46  ;;  %v1439_v46 = vld [vmem:[%s2072_s1 + $0x44] ss:$16 sps:$4 sm:$0xff]  }
 0x50d   :  { %1373 = vtanh.f32 %v782_v35  ;;  %v1440_v35 = vld [vmem:[%s2072_s1 + $0x4c] ss:$16 sps:$4 sm:$0xff]  }
 0x514   :  { %v1368_v47 = vpop.eup %1367 }
 0x515   :  { %v1370_v49 = vpop.eup %1369  ;;  %v787_v50 = vadd.f32 1.0, %v1368_v47  ;;  %v1442_v47 = vld [vmem:[%s2072_s1 + $0x48] ss:$16 sps:$4 sm:$0xff]  }
 0x516   :  { %v793_v51 = vadd.f32 1.0, %v1370_v49  ;;  %v1372_v52 = vpop.eup %1371  ;;  %v1443_v49 = vld [vmem:[%s2072_s1 + $0x64] ss:$16 sps:$4 sm:$0xff]  }
 0x517   :  { %1375 = vrcp.f32 %v787_v50  ;;  %v1374_v42 = vpop.eup %1373  ;;  %v800_v57 = vadd.f32 1.0, %v1372_v52  ;;  %v1444_v50 = vld [vmem:[%s2072_s1 + $0x6c] ss:$16 sps:$4 sm:$0xff]   ;;  %v1446_v52 = vld [vmem:[%s2072_s1 + $0x68] ss:$16 sps:$4 sm:$0xff]  }
 0x518   :  { %1377 = vrcp.f32 %v793_v51  ;;  %v1445_v51 = vld [vmem:[%s2072_s1 + $0x60] ss:$16 sps:$4 sm:$0xff]  }
 0x519   :  { %1379 = vrcp.f32 %v800_v57  ;;  %v1451_v57 = vld [vmem:[%s2072_s1 + $0xa4] ss:$16 sps:$4 sm:$0xff]  }
 0x521   :  { %v1376_v53 = vpop.eup %1375 }
 0x522   :  { %v1378_v55 = vpop.eup %1377  ;;  %v804_v56 = vmul.f32 %v1376_v53, %v1374_v42  ;;  %v1447_v42 = vld [vmem:[%s2072_s1 + $0x84] ss:$16 sps:$4 sm:$0xff]   ;;  %v1448_v53 = vld [vmem:[%s2072_s1 + $0x8c] ss:$16 sps:$4 sm:$0xff]  }
 0x523   :  { %v803_v58 = vmul.f32 %v1378_v55, %v1857_v54  ;;  %v1380_v59 = vpop.eup %1379  ;;  %v1449_v55 = vld [vmem:[%s2072_s1 + $0x80] ss:$16 sps:$4 sm:$0xff]  }
 0x525   :  { %v1904_v48 = vadd.f32 %v804_v56, %v803_v58  ;;  %v1450_v56 = vld [vmem:[%s2072_s1 + $0x88] ss:$16 sps:$4 sm:$0xff]   ;;  %v1452_v58 = vld [vmem:[%s2072_s1 + $0xac] ss:$16 sps:$4 sm:$0xff]  }
 0x527   :  { %1381 = vtanh.f32 %v1904_v48 }
 0x531   :  { %v1382_v60 = vpop.eup %1381 }
 0x532   :  { %v807_v61 = vmul.f32 %v1382_v60, %v1380_v59  ;;  %v1454_v59 = vld [vmem:[%s2072_s1 + $0xa8] ss:$16 sps:$4 sm:$0xff]   ;;  %v1455_v60 = vld [vmem:[%s2072_s1 + $0xc4] ss:$16 sps:$4 sm:$0xff]  }
 0x534   :  { %1234 = vst [vmem:[%s2074_s2 + $0x20] sm:$0xff] %v807_v61  ;;  %v817_v62 = vpack.c.bf16 %v807_v61, %v807_v61  ;;  %v1456_v61 = vld [vmem:[%s2072_s1 + $0xcc] ss:$16 sps:$4 sm:$0xff]  }
 0x536   :  { %851 = vmatmul.mubr.bf16.vlgmr.msra.gmra.mrb[20].mxu0 %v817_v62  ;;  %892 = vmatmul.mubr.bf16.vlgmr.msra.gmra.mrb[20].mxu1 %v817_v62  ;;  %v1457_v62 = vld [vmem:[%s2072_s1 + $0xc0] ss:$16 sps:$4 sm:$0xff]  }
 0x537   :  { %939 = vmatpush1.bf16.msra.mxu0 %v1490_v2  ;;  %980 = vmatpush1.bf16.msra.mxu1 %v1518_v7  ;;  %v1431_v2 = vld [vmem:[%s2072_s1 + $0x4] ss:$16 sps:$4 sm:$0xff]  }
 0x538   :  { %940 = vmatprep.subr.bf16.mxu0 %v1496_v3  ;;  %981 = vmatprep.subr.bf16.mxu1 %v1537_v10  ;;  %v1432_v3 = vld [vmem:[%s2072_s1 + $0xc] ss:$16 sps:$4 sm:$0xff]  }
 0x539   :  { %970 = vmatprep.mubr.bf16.mxu0 %v1463_v1  ;;  %1011 = vmatprep.mubr.bf16.mxu1 %v1463_v1 }
 0x53b   :  { %941 = vmatpush1.bf16.msra.mxu0 %v1502_v4  ;;  %982 = vmatpush1.bf16.msra.mxu1 %v1542_v11  ;;  %v1235_v4 = vld [vmem:[%s2073_s0 + $0x50] sm:$0xff]  ;;  %v1236_v11 = vld [vmem:[%s2073_s0 + $0x58] sm:$0xff] }
 0x53c   :  { %942 = vmatprep.subr.bf16.mxu0 %v1508_v5  ;;  %983 = vmatprep.subr.bf16.mxu1 %v1559_v14  ;;  %v813_v5 = vunpack.c.l.bf16 %v1235_v4  ;;  %v814_v7 = vunpack.c.h.bf16 %v1235_v4  ;;  %v1460_v4 = vld [vmem:[%s2072_s1 + $0xec] ss:$16 sps:$4 sm:$0xff]  }
 0x53f   :  { %943 = vmatpush1.bf16.msra.mxu0 %v1524_v8  ;;  %984 = vmatpush1.bf16.msra.mxu1 %v1566_v15 }
 0x540   :  { %944 = vmatprep.subr.bf16.mxu0 %v1531_v9  ;;  %985 = vmatprep.subr.bf16.mxu1 %v1572_v16 }
 0x543   :  { %945 = vmatpush1.bf16.msra.mxu0 %v1549_v12  ;;  %986 = vmatpush1.bf16.msra.mxu1 %v1590_v19 }
 0x544   :  { %946 = vmatprep.subr.bf16.mxu0 %v1554_v13  ;;  %987 = vmatprep.subr.bf16.mxu1 %v1596_v20 }
 0x547   :  { %947 = vmatpush1.bf16.msra.mxu0 %v1578_v17  ;;  %988 = vmatpush1.bf16.msra.mxu1 %v1614_v23  ;;  %v815_v23 = vunpack.c.l.bf16 %v1236_v11 }
 0x548   :  { %948 = vmatprep.subr.bf16.mxu0 %v1584_v18  ;;  %989 = vmatprep.subr.bf16.mxu1 %v1620_v24 }
 0x54b   :  { %949 = vmatpush1.bf16.msra.mxu0 %v1602_v21  ;;  %990 = vmatpush1.bf16.msra.mxu1 %v1638_v27  ;;  %v816_v21 = vunpack.c.h.bf16 %v1236_v11 }
 0x54c   :  { %950 = vmatprep.subr.bf16.mxu0 %v1607_v22  ;;  %991 = vmatprep.subr.bf16.mxu1 %v1644_v28 }
 0x54f   :  { %951 = vmatpush1.bf16.msra.mxu0 %v1626_v25  ;;  %992 = vmatpush1.bf16.msra.mxu1 %v1657_v30 }
 0x550   :  { %952 = vmatprep.subr.bf16.mxu0 %v1632_v26  ;;  %993 = vmatprep.subr.bf16.mxu1 %v1663_v31 }
 0x553   :  { %953 = vmatpush1.bf16.msra.mxu0 %v1650_v29  ;;  %994 = vmatpush1.bf16.msra.mxu1 %v1670_v32 }
 0x554   :  { %1058 = vmatprep.subr.bf16.mxu0 %v1431_v2  ;;  %1099 = vmatprep.subr.bf16.mxu1 %v1432_v3  ;;  %v1458_v2 = vld [vmem:[%s2072_s1 + $0xc8] ss:$16 sps:$4 sm:$0xff]   ;;  %v1459_v3 = vld [vmem:[%s2072_s1 + $0xe4] ss:$16 sps:$4 sm:$0xff]  }
 0x609   :  { %v852_v8 = vpop.f32.mrb[20].mxu0  ;;  %v893_v9 = vpop.f32.mrb[20].mxu1 }
 0x60a   :  { %v900_v10 = vadd.f32 %v852_v8, %v813_v5  ;;  %v854_v12 = vpop.f32.mrb[21].mxu0  ;;  %v895_v13 = vpop.f32.mrb[21].mxu1  ;;  %v902_v25 = vadd.f32 %v893_v9, %v815_v23  ;;  %v1461_v5 = vld [vmem:[%s2072_s1 + $0xe0] ss:$16 sps:$4 sm:$0xff]  }
 0x60b   :  { %v901_v14 = vadd.f32 %v854_v12, %v814_v7  ;;  %v856_v15 = vpop.f32.mrb[22].mxu0  ;;  %v897_v16 = vpop.f32.mrb[22].mxu1  ;;  %v903_v22 = vadd.f32 %v895_v13, %v816_v21  ;;  %v1462_v7 = vld [vmem:[%s2072_s1 + $0xe8] ss:$16 sps:$4 sm:$0xff]   ;;  %v1241_v8 = vld [vmem:[%s2073_s0 + $0x60] sm:$0xff] }
 0x60c   :  { %v1237_v17 = vmul.f32 -1.442695, %v900_v10  ;;  %v857_v18 = vpop.f32.mrb[23].mxu0  ;;  %v898_v19 = vpop.f32.mrb[23].mxu1  ;;  %v933_v9 = vunpack.c.l.bf16 %v1241_v8  ;;  %v934_v10 = vunpack.c.h.bf16 %v1241_v8 }
 0x60d   :  { %v1238_v20 = vmul.f32 -1.442695, %v901_v14  ;;  %v1239_v24 = vmul.f32 -1.442695, %v903_v22  ;;  %v1242_v14 = vld [vmem:[%s2073_s0 + $0x68] sm:$0xff] }
 0x60e   :  { %1383 = vpow2.f32 %v1237_v17 }
 0x60f   :  { %1385 = vpow2.f32 %v1238_v20 }
 0x610   :  { %1387 = vpow2.f32 %v1239_v24  ;;  %v936_v24 = vunpack.c.h.bf16 %v1242_v14 }
 0x611   :  { %1389 = vtanh.f32 %v902_v25 }
 0x618   :  { %v1384_v26 = vpop.eup %1383 }
 0x619   :  { %v1386_v27 = vpop.eup %1385  ;;  %v907_v28 = vadd.f32 1.0, %v1384_v26  ;;  %v935_v26 = vunpack.c.l.bf16 %v1242_v14 }
 0x61a   :  { %v913_v29 = vadd.f32 1.0, %v1386_v27  ;;  %v1388_v30 = vpop.eup %1387 }
 0x61b   :  { %1391 = vrcp.f32 %v907_v28  ;;  %v1390_v31 = vpop.eup %1389  ;;  %v920_v33 = vadd.f32 1.0, %v1388_v30 }
 0x61c   :  { %1393 = vrcp.f32 %v913_v29 }
 0x61d   :  { %1395 = vrcp.f32 %v920_v33 }
 0x625   :  { %v1392_v32 = vpop.eup %1391 }
 0x626   :  { %v1394_v54 = vpop.eup %1393  ;;  %v924_v63 = vmul.f32 %v1392_v32, %v1390_v31 }
 0x627   :  { %v923_v34 = vmul.f32 %v1394_v54, %v1904_v48  ;;  %v1396_v37 = vpop.eup %1395  ;;  %v1453_v48 = vld [vmem:[%s2072_s1 + $0xa0] ss:$16 sps:$4 sm:$0xff]  }
 0x629   :  { %v1955_v36 = vadd.f32 %v924_v63, %v923_v34 }
 0x62b   :  { %1397 = vtanh.f32 %v1955_v36 }
 0x635   :  { %v1398_v38 = vpop.eup %1397 }
 0x636   :  { %v927_v0 = vmul.f32 %v1398_v38, %v1396_v37 }
 0x638   :  { %1240 = vst [vmem:[%s2074_s2 + $0x28] sm:$0xff] %v927_v0  ;;  %v937_v39 = vpack.c.bf16 %v927_v0, %v927_v0 }
 0x63a   :  { %971 = vmatmul.mubr.bf16.vlgmr.msra.gmra.mrb[24].mxu0 %v937_v39  ;;  %1012 = vmatmul.mubr.bf16.vlgmr.msra.gmra.mrb[24].mxu1 %v937_v39 }
 0x63b   :  { %1059 = vmatpush1.bf16.msra.mxu0 %v1433_v6  ;;  %1100 = vmatpush1.bf16.msra.mxu1 %v1434_v40 }
 0x63c   :  { %1060 = vmatprep.subr.bf16.mxu0 %v1435_v41  ;;  %1101 = vmatprep.subr.bf16.mxu1 %v1436_v43 }
 0x63d   :  { %1090 = vmatprep.mubr.bf16.mxu0 %v1463_v1  ;;  %1131 = vmatprep.mubr.bf16.mxu1 %v1463_v1  ;;  %v1441_v1 = vld [vmem:[%s2072_s1 + $0x40] ss:$16 sps:$4 sm:$0xff]  }
 0x63f   :  { %1061 = vmatpush1.bf16.msra.mxu0 %v1437_v44  ;;  %1102 = vmatpush1.bf16.msra.mxu1 %v1438_v45  ;;  %v1247_v44 = vld [vmem:[%s2073_s0 + $0x70] sm:$0xff] }
 0x640   :  { %1062 = vmatprep.subr.bf16.mxu0 %v1439_v46  ;;  %1103 = vmatprep.subr.bf16.mxu1 %v1440_v35  ;;  %v1053_v45 = vunpack.c.l.bf16 %v1247_v44  ;;  %v1054_v46 = vunpack.c.h.bf16 %v1247_v44 }
 0x643   :  { %1063 = vmatpush1.bf16.msra.mxu0 %v1441_v1  ;;  %1104 = vmatpush1.bf16.msra.mxu1 %v1442_v47  ;;  %v1248_v47 = vld [vmem:[%s2073_s0 + $0x78] sm:$0xff] }
 0x644   :  { %1064 = vmatprep.subr.bf16.mxu0 %v1443_v49  ;;  %1105 = vmatprep.subr.bf16.mxu1 %v1444_v50 }
 0x647   :  { %1065 = vmatpush1.bf16.msra.mxu0 %v1445_v51  ;;  %1106 = vmatpush1.bf16.msra.mxu1 %v1446_v52 }
 0x648   :  { %1066 = vmatprep.subr.bf16.mxu0 %v1447_v42  ;;  %1107 = vmatprep.subr.bf16.mxu1 %v1448_v53 }
 0x64b   :  { %1067 = vmatpush1.bf16.msra.mxu0 %v1449_v55  ;;  %1108 = vmatpush1.bf16.msra.mxu1 %v1450_v56 }
 0x64c   :  { %1068 = vmatprep.subr.bf16.mxu0 %v1451_v57  ;;  %1109 = vmatprep.subr.bf16.mxu1 %v1452_v58  ;;  %v1056_v58 = vunpack.c.h.bf16 %v1248_v47 }
 0x64f   :  { %1069 = vmatpush1.bf16.msra.mxu0 %v1453_v48  ;;  %1110 = vmatpush1.bf16.msra.mxu1 %v1454_v59  ;;  %v1055_v59 = vunpack.c.l.bf16 %v1248_v47 }
 0x650   :  { %1070 = vmatprep.subr.bf16.mxu0 %v1455_v60  ;;  %1111 = vmatprep.subr.bf16.mxu1 %v1456_v61 }
 0x653   :  { %1071 = vmatpush1.bf16.msra.mxu0 %v1457_v62  ;;  %1112 = vmatpush1.bf16.msra.mxu1 %v1458_v2 }
 0x654   :  { %1072 = vmatprep.subr.bf16.mxu0 %v1459_v3  ;;  %1113 = vmatprep.subr.bf16.mxu1 %v1460_v4 }
 0x657   :  { %1073 = vmatpush1.bf16.msra.mxu0 %v1461_v5  ;;  %1114 = vmatpush1.bf16.msra.mxu1 %v1462_v7 }
 0x70d   :  { %v972_v11 = vpop.f32.mrb[24].mxu0  ;;  %v1013_v12 = vpop.f32.mrb[24].mxu1 }
 0x70e   :  { %v1020_v13 = vadd.f32 %v972_v11, %v933_v9  ;;  %v974_v15 = vpop.f32.mrb[25].mxu0  ;;  %v1015_v16 = vpop.f32.mrb[25].mxu1  ;;  %v1022_v28 = vadd.f32 %v1013_v12, %v935_v26 }
 0x70f   :  { %v1021_v17 = vadd.f32 %v974_v15, %v934_v10  ;;  %v976_v18 = vpop.f32.mrb[26].mxu0  ;;  %v1017_v19 = vpop.f32.mrb[26].mxu1  ;;  %v1023_v25 = vadd.f32 %v1015_v16, %v936_v24 }
 0x710   :  { %v1243_v20 = vmul.f32 -1.442695, %v1020_v13  ;;  %v977_v21 = vpop.f32.mrb[27].mxu0  ;;  %v1018_v22 = vpop.f32.mrb[27].mxu1 }
 0x711   :  { %v1244_v23 = vmul.f32 -1.442695, %v1021_v17  ;;  %v1245_v27 = vmul.f32 -1.442695, %v1023_v25 }
 0x712   :  { %1399 = vpow2.f32 %v1243_v20 }
 0x713   :  { %1401 = vpow2.f32 %v1244_v23 }
 0x714   :  { %1403 = vpow2.f32 %v1245_v27 }
 0x715   :  { %1405 = vtanh.f32 %v1022_v28 }
 0x71c   :  { %v1400_v29 = vpop.eup %1399 }
 0x71d   :  { %v1402_v30 = vpop.eup %1401  ;;  %v1027_v31 = vadd.f32 1.0, %v1400_v29 }
 0x71e   :  { %v1033_v32 = vadd.f32 1.0, %v1402_v30  ;;  %v1404_v54 = vpop.eup %1403 }
 0x71f   :  { %1407 = vrcp.f32 %v1027_v31  ;;  %v1406_v63 = vpop.eup %1405  ;;  %v1040_v38 = vadd.f32 1.0, %v1404_v54 }
 0x720   :  { %1409 = vrcp.f32 %v1033_v32 }
 0x721   :  { %1411 = vrcp.f32 %v1040_v38 }
 0x729   :  { %v1408_v33 = vpop.eup %1407 }
 0x72a   :  { %v1410_v34 = vpop.eup %1409  ;;  %v1044_v37 = vmul.f32 %v1408_v33, %v1406_v63 }
 0x72b   :  { %v1043_v0 = vmul.f32 %v1410_v34, %v1955_v36  ;;  %v1412_v6 = vpop.eup %1411 }
 0x72d   :  { %v1045_v39 = vadd.f32 %v1044_v37, %v1043_v0 }
 0x72f   :  { %1413 = vtanh.f32 %v1045_v39 }
 0x739   :  { %v1414_v40 = vpop.eup %1413 }
 0x73a   :  { %v1047_v41 = vmul.f32 %v1414_v40, %v1412_v6 }
 0x73c   :  { %1246 = vst [vmem:[%s2074_s2 + $0x30] sm:$0xff] %v1047_v41  ;;  %v1057_v43 = vpack.c.bf16 %v1047_v41, %v1047_v41 }
 0x73e   :  { %1091 = vmatmul.mubr.bf16.vlgmr.msra.gmra.mrb[28].mxu0 %v1057_v43  ;;  %1132 = vmatmul.mubr.bf16.vlgmr.msra.gmra.mrb[28].mxu1 %v1057_v43 }
 0x811   :  { %v1092_v36 = vpop.f32.mrb[28].mxu0  ;;  %v1133_v35 = vpop.f32.mrb[28].mxu1 }
 0x812   :  { %v1140_v1 = vadd.f32 %v1092_v36, %v1053_v45  ;;  %v1094_v49 = vpop.f32.mrb[29].mxu0  ;;  %v1135_v50 = vpop.f32.mrb[29].mxu1  ;;  %v1142_v61 = vadd.f32 %v1133_v35, %v1055_v59 }
 0x813   :  { %v1141_v51 = vadd.f32 %v1094_v49, %v1054_v46  ;;  %v1096_v52 = vpop.f32.mrb[30].mxu0  ;;  %v1137_v42 = vpop.f32.mrb[30].mxu1  ;;  %v1143_v48 = vadd.f32 %v1135_v50, %v1056_v58 }
 0x814   :  { %v1249_v53 = vmul.f32 -1.442695, %v1140_v1  ;;  %v1097_v55 = vpop.f32.mrb[31].mxu0  ;;  %v1138_v56 = vpop.f32.mrb[31].mxu1 }
 0x815   :  { %v1250_v57 = vmul.f32 -1.442695, %v1141_v51  ;;  %v1251_v60 = vmul.f32 -1.442695, %v1143_v48 }
 0x816   :  { %1415 = vpow2.f32 %v1249_v53 }
 0x817   :  { %1417 = vpow2.f32 %v1250_v57 }
 0x818   :  { %1419 = vpow2.f32 %v1251_v60 }
 0x819   :  { %1421 = vtanh.f32 %v1142_v61 }
 0x820   :  { %v1416_v62 = vpop.eup %1415 }
 0x821   :  { %v1418_v2 = vpop.eup %1417  ;;  %v1147_v3 = vadd.f32 1.0, %v1416_v62 }
 0x822   :  { %v1153_v4 = vadd.f32 1.0, %v1418_v2  ;;  %v1420_v5 = vpop.eup %1419 }
 0x823   :  { %1423 = vrcp.f32 %v1147_v3  ;;  %v1422_v7 = vpop.eup %1421  ;;  %v1160_v11 = vadd.f32 1.0, %v1420_v5 }
 0x824   :  { %1425 = vrcp.f32 %v1153_v4 }
 0x825   :  { %1427 = vrcp.f32 %v1160_v11 }
 0x82d   :  { %v1424_v8 = vpop.eup %1423 }
 0x82e   :  { %v1426_v9 = vpop.eup %1425  ;;  %v1164_v10 = vmul.f32 %v1424_v8, %v1422_v7 }
 0x82f   :  { %v1163_v12 = vmul.f32 %v1426_v9, %v1045_v39  ;;  %v1428_v14 = vpop.eup %1427 }
 0x831   :  { %v1165_v13 = vadd.f32 %v1164_v10, %v1163_v12 }
 0x833   :  { %1429 = vtanh.f32 %v1165_v13 }
 0x83d   :  { %v1430_v15 = vpop.eup %1429 }
 0x83e   :  { %v1167_v16 = vmul.f32 %v1430_v15, %v1428_v14 }
 0x840   :  { %1252 = vst [vmem:[%s2074_s2 + $0x38] sm:$0xff] %v1167_v16 }

</bundles_post_ra>
